<compile_context>
chip_gen: v5e
topology: v5e:2x2
jax: 0.10.0
libtpu: 0.0.40
codegen_flags: <defaults>
</compile_context>

<pallas_src>
import functools

import jax
import jax.numpy as jnp
from jax import lax
from jax.experimental import pallas as pl
from jax.experimental.pallas import tpu as pltpu


def _fused_irev_kernel(x2_ref, x1_ref,
                       s1_ref, t1_ref, w1_ref,
                       s2_ref, t2_ref, w2_ref,
                       s3_ref, t3_ref, w3_ref,
                       y1_ref,
                       pad_in_ref, pad_mid_ref,
                       *, H):
    """One grid step == one image; activations are (H, W*C), lane-dense."""

    # Zero only the halo rows (row 0 and row H+1) of both row-padded scratch
    # buffers.  The body only ever writes rows 1..H, but scratch persists
    # across grid iterations, so re-zero every step (cheap: 4 row stores).
    for pad_ref in (pad_in_ref, pad_mid_ref):
        zrow = jnp.zeros((1, pad_ref.shape[1]), jnp.float32)
        pad_ref[0:1, :] = zrow
        pad_ref[H + 1:H + 2, :] = zrow

    def pre_conv3x3(x, scale_ref, shift_ref, wbig_ref, pad_ref):
        # Folded BatchNorm + ReLU, written straight into the row-padded buffer.
        pad_ref[1:H + 1, :] = jnp.maximum(x * scale_ref[...] + shift_ref[...], 0.0)
        n_out = wbig_ref.shape[2]
        acc = jnp.zeros((H, n_out), jnp.float32)
        # 3x3 SAME conv == three vertically shifted (H, W*Cin) @ (W*Cin, W*Cout)
        # MXU matmuls; the kw taps + W-padding are baked into wbig (banded).
        for kh in range(3):   # static, unrolled
            acc = acc + jnp.dot(pad_ref[kh:kh + H, :], wbig_ref[kh],
                                preferred_element_type=jnp.float32)
        return acc

    h = pre_conv3x3(x2_ref[0], s1_ref, t1_ref, w1_ref, pad_in_ref)    # (H, W*mid)
    h = pre_conv3x3(h, s2_ref, t2_ref, w2_ref, pad_mid_ref)           # (H, W*mid)
    fx2 = pre_conv3x3(h, s3_ref, t3_ref, w3_ref, pad_mid_ref)         # (H, W*C)
    y1_ref[0] = fx2 + x1_ref[0]                                       # y1 = fx2 + x1


def fold_bn(gamma, beta, mean, var, eps=1e-5):
    scale = gamma / jnp.sqrt(var + eps)
    shift = beta - mean * scale
    return scale, shift


def _band_weight(w, width):
    """OIHW conv weight (Cout, Cin, 3, 3) -> (3, W*Cin, W*Cout) banded matrices.

    big[kh, x_in*Cin + ci, x_out*Cout + co] = w[co, ci, kh, x_in - x_out + 1]
    when 0 <= x_in - x_out + 1 <= 2, else 0 (encodes the kw taps and the SAME
    zero-padding along W).
    """
    cout, cin = w.shape[0], w.shape[1]
    x_in = jnp.arange(width)[:, None]
    x_out = jnp.arange(width)[None, :]
    kw = x_in - x_out + 1                                   # (W, W)
    valid = (kw >= 0) & (kw <= 2)
    kw_c = jnp.clip(kw, 0, 2)
    taps = jnp.transpose(w, (2, 3, 1, 0))                   # (kh, kw, ci, co)
    big = taps[:, kw_c] * valid[None, :, :, None, None]     # (3, x_in, x_out, ci, co)
    big = jnp.transpose(big, (0, 1, 3, 2, 4))               # (3, x_in, ci, x_out, co)
    return big.reshape(3, width * cin, width * cout).astype(jnp.float32)


def irev_unit_forward(x1, x2, params):
    """IRevUnit.forward (stride=1, preactivate=True, in==out). NCHW in / NCHW out."""
    B, C, H, W = x2.shape
    mid = C // 4
    cw, mw = C * W, mid * W

    def to_rows(x):   # (B, C, H, W) -> (B, H, W*C)   (lane index = x*C + c)
        return jnp.transpose(x, (0, 2, 3, 1)).reshape(B, H, W * x.shape[1])

    def tile_vec(v):  # (Cin,) -> (1, W*Cin), matching the lane layout above
        return jnp.tile(v, W).reshape(1, -1)

    (s1, t1, w1) = params["block1"]
    (s2, t2, w2) = params["block2"]
    (s3, t3, w3) = params["block3"]

    args = (to_rows(x2), to_rows(x1),
            tile_vec(s1), tile_vec(t1), _band_weight(w1, W),
            tile_vec(s2), tile_vec(t2), _band_weight(w2, W),
            tile_vec(s3), tile_vec(t3), _band_weight(w3, W))

    img_spec = pl.BlockSpec((1, H, cw), lambda b: (b, 0, 0))

    def const_spec(shape):
        nd = len(shape)
        return pl.BlockSpec(shape, lambda b: (0,) * nd)

    in_specs = [
        img_spec,                       # x2 rows
        img_spec,                       # x1 rows (residual)
        const_spec((1, cw)), const_spec((1, cw)), const_spec((3, cw, mw)),
        const_spec((1, mw)), const_spec((1, mw)), const_spec((3, mw, mw)),
        const_spec((1, mw)), const_spec((1, mw)), const_spec((3, mw, cw)),
    ]

    y1_rows = pl.pallas_call(
        functools.partial(_fused_irev_kernel, H=H),
        out_shape=jax.ShapeDtypeStruct((B, H, cw), jnp.float32),
        grid=(B,),
        in_specs=in_specs,
        out_specs=img_spec,
        scratch_shapes=[pltpu.VMEM((H + 2, cw), jnp.float32),
                        pltpu.VMEM((H + 2, mw), jnp.float32)],
        compiler_params=pltpu.CompilerParams(
            dimension_semantics=("parallel",)),
    )(*args)

    y1 = jnp.transpose(y1_rows.reshape(B, H, W, C), (0, 3, 1, 2))
    return x2, y1


# ---------------- pure-JAX reference (for correctness check) ----------------
def _ref_preconv(x, scale, shift, w):
    a = jnp.maximum(x * scale.reshape(1, -1, 1, 1) + shift.reshape(1, -1, 1, 1), 0.0)
    return lax.conv_general_dilated(
        a, w, window_strides=(1, 1), padding=((1, 1), (1, 1)),
        dimension_numbers=("NCHW", "OIHW", "NCHW"))


if __name__ == "__main__":
    key = jax.random.PRNGKey(0)
    B, C, H, W = 2, 16, 16, 16          # in_channels = out_channels = 16
    mid = C // 4

    ks = jax.random.split(key, 5)
    x1 = jax.random.normal(ks[0], (B, C, H, W), jnp.float32)
    x2 = jax.random.normal(ks[1], (B, C, H, W), jnp.float32)

    def make_block(k, cin, cout):
        k1, k2, k3, k4, k5 = jax.random.split(k, 5)
        gamma = 1.0 + 0.1 * jax.random.normal(k1, (cin,), jnp.float32)
        beta = 0.1 * jax.random.normal(k2, (cin,), jnp.float32)
        mean = 0.1 * jax.random.normal(k3, (cin,), jnp.float32)
        var = 1.0 + 0.1 * jax.random.uniform(k4, (cin,), jnp.float32)
        w = 0.1 * jax.random.normal(k5, (cout, cin, 3, 3), jnp.float32)   # OIHW
        scale, shift = fold_bn(gamma, beta, mean, var)
        return (scale, shift, w)

    params = {
        "block1": make_block(ks[2], C, mid),    # pre_conv3x3_block(C   -> mid)
        "block2": make_block(ks[3], mid, mid),  # pre_conv3x3_block(mid -> mid)
        "block3": make_block(ks[4], mid, C),    # pre_conv3x3_block(mid -> C)
    }

    out_x2, y1 = jax.jit(irev_unit_forward)(x1, x2, params)
    jax.block_until_ready((out_x2, y1))

    # correctness check against a pure-JAX reference
    r = _ref_preconv(x2, *params["block1"])
    r = _ref_preconv(r, *params["block2"])
    r = _ref_preconv(r, *params["block3"]) + x1
    assert jnp.allclose(out_x2, x2)
    err = float(jnp.max(jnp.abs(y1 - r)))
    assert jnp.allclose(y1, r, atol=1e-4, rtol=1e-4), err

    print("KERNEL_OK")
</pallas_src>

<mosaic_0001>
module attributes {stable_mosaic.version = 11 : i64} {
  func.func @_fused_irev_kernel(%arg0: i32, %arg1: memref<1x16x256xf32, #tpu.memory_space<vmem>>, %arg2: memref<1x16x256xf32, #tpu.memory_space<vmem>>, %arg3: memref<1x256xf32, #tpu.memory_space<vmem>>, %arg4: memref<1x256xf32, #tpu.memory_space<vmem>>, %arg5: memref<3x256x64xf32, #tpu.memory_space<vmem>>, %arg6: memref<1x64xf32, #tpu.memory_space<vmem>>, %arg7: memref<1x64xf32, #tpu.memory_space<vmem>>, %arg8: memref<3x64x64xf32, #tpu.memory_space<vmem>>, %arg9: memref<1x64xf32, #tpu.memory_space<vmem>>, %arg10: memref<1x64xf32, #tpu.memory_space<vmem>>, %arg11: memref<3x64x256xf32, #tpu.memory_space<vmem>>, %arg12: memref<1x16x256xf32, #tpu.memory_space<vmem>>, %arg13: memref<18x256xf32, #tpu.memory_space<vmem>>, %arg14: memref<18x64xf32, #tpu.memory_space<vmem>>) attributes {dimension_semantics = [#tpu.dimension_semantics<parallel>], iteration_bounds = array<i64: 2>, scalar_prefetch = 0 : i64, scratch_operands = 2 : i64, tpu.core_type = #tpu.core_type<tc>, window_params = [{transform_indices = @transform_0, window_bounds = array<i64: 1, 16, 256>}, {transform_indices = @transform_1, window_bounds = array<i64: 1, 16, 256>}, {pipeline_mode = #tpu.pipeline_mode<synchronous>, transform_indices = @transform_2, window_bounds = array<i64: 1, 256>}, {pipeline_mode = #tpu.pipeline_mode<synchronous>, transform_indices = @transform_3, window_bounds = array<i64: 1, 256>}, {pipeline_mode = #tpu.pipeline_mode<synchronous>, transform_indices = @transform_4, window_bounds = array<i64: 3, 256, 64>}, {pipeline_mode = #tpu.pipeline_mode<synchronous>, transform_indices = @transform_5, window_bounds = array<i64: 1, 64>}, {pipeline_mode = #tpu.pipeline_mode<synchronous>, transform_indices = @transform_6, window_bounds = array<i64: 1, 64>}, {pipeline_mode = #tpu.pipeline_mode<synchronous>, transform_indices = @transform_7, window_bounds = array<i64: 3, 64, 64>}, {pipeline_mode = #tpu.pipeline_mode<synchronous>, transform_indices = @transform_8, window_bounds = array<i64: 1, 64>}, {pipeline_mode = #tpu.pipeline_mode<synchronous>, transform_indices = @transform_9, window_bounds = array<i64: 1, 64>}, {pipeline_mode = #tpu.pipeline_mode<synchronous>, transform_indices = @transform_10, window_bounds = array<i64: 3, 64, 256>}, {transform_indices = @transform_11, window_bounds = array<i64: 1, 16, 256>}]} {
    %cst = arith.constant 0.000000e+00 : f32
    %0 = vector.broadcast %cst : f32 to vector<1x256xf32>
    %c0 = arith.constant 0 : index
    %c0_0 = arith.constant 0 : index
    %1 = vector.load %arg13[%c0, %c0_0] : memref<18x256xf32, #tpu.memory_space<vmem>>, vector<1x256xf32>
    tpu.vector_store %arg13[%c0, %c0_0], %0 {strides = array<i32>} : memref<18x256xf32, #tpu.memory_space<vmem>>, vector<1x256xf32>,
    %c17 = arith.constant 17 : index
    %c0_1 = arith.constant 0 : index
    %2 = vector.load %arg13[%c17, %c0_1] : memref<18x256xf32, #tpu.memory_space<vmem>>, vector<1x256xf32>
    tpu.vector_store %arg13[%c17, %c0_1], %0 {strides = array<i32>} : memref<18x256xf32, #tpu.memory_space<vmem>>, vector<1x256xf32>,
    %cst_2 = arith.constant 0.000000e+00 : f32
    %3 = vector.broadcast %cst_2 : f32 to vector<1x64xf32>
    %c0_3 = arith.constant 0 : index
    %c0_4 = arith.constant 0 : index
    %4 = vector.load %arg14[%c0_3, %c0_4] : memref<18x64xf32, #tpu.memory_space<vmem>>, vector<1x64xf32>
    tpu.vector_store %arg14[%c0_3, %c0_4], %3 {strides = array<i32>} : memref<18x64xf32, #tpu.memory_space<vmem>>, vector<1x64xf32>,
    %c17_5 = arith.constant 17 : index
    %c0_6 = arith.constant 0 : index
    %5 = vector.load %arg14[%c17_5, %c0_6] : memref<18x64xf32, #tpu.memory_space<vmem>>, vector<1x64xf32>
    tpu.vector_store %arg14[%c17_5, %c0_6], %3 {strides = array<i32>} : memref<18x64xf32, #tpu.memory_space<vmem>>, vector<1x64xf32>,
    %c0_7 = arith.constant 0 : index
    %c0_8 = arith.constant 0 : index
    %c0_9 = arith.constant 0 : index
    %6 = vector.load %arg1[%c0_7, %c0_8, %c0_9] : memref<1x16x256xf32, #tpu.memory_space<vmem>>, vector<1x16x256xf32>
    %7 = vector.shape_cast %6 : vector<1x16x256xf32> to vector<16x256xf32>
    %c0_10 = arith.constant 0 : index
    %c0_11 = arith.constant 0 : index
    %8 = vector.load %arg3[%c0_10, %c0_11] : memref<1x256xf32, #tpu.memory_space<vmem>>, vector<1x256xf32>
    %9 = vector.broadcast %8 : vector<1x256xf32> to vector<16x256xf32>
    %10 = arith.mulf %7, %9 : vector<16x256xf32>
    %c0_12 = arith.constant 0 : index
    %c0_13 = arith.constant 0 : index
    %11 = vector.load %arg4[%c0_12, %c0_13] : memref<1x256xf32, #tpu.memory_space<vmem>>, vector<1x256xf32>
    %12 = vector.broadcast %11 : vector<1x256xf32> to vector<16x256xf32>
    %13 = arith.addf %10, %12 : vector<16x256xf32>
    %cst_14 = arith.constant 0.000000e+00 : f32
    %14 = vector.broadcast %cst_14 : f32 to vector<16x256xf32>
    %15 = arith.maximumf %13, %14 : vector<16x256xf32>
    %c1 = arith.constant 1 : index
    %c0_15 = arith.constant 0 : index
    %16 = vector.load %arg13[%c1, %c0_15] : memref<18x256xf32, #tpu.memory_space<vmem>>, vector<16x256xf32>
    tpu.vector_store %arg13[%c1, %c0_15], %15 {strides = array<i32>} : memref<18x256xf32, #tpu.memory_space<vmem>>, vector<16x256xf32>,
    %cst_16 = arith.constant 0.000000e+00 : f32
    %17 = vector.broadcast %cst_16 : f32 to vector<16x64xf32>
    %c0_17 = arith.constant 0 : index
    %c0_18 = arith.constant 0 : index
    %18 = vector.load %arg13[%c0_17, %c0_18] : memref<18x256xf32, #tpu.memory_space<vmem>>, vector<16x256xf32>
    %c0_19 = arith.constant 0 : index
    %c0_20 = arith.constant 0 : index
    %c0_21 = arith.constant 0 : index
    %19 = vector.load %arg5[%c0_19, %c0_20, %c0_21] : memref<3x256x64xf32, #tpu.memory_space<vmem>>, vector<1x256x64xf32>
    %20 = vector.shape_cast %19 : vector<1x256x64xf32> to vector<256x64xf32>
    %cst_22 = arith.constant dense<0.000000e+00> : vector<16x64xf32>
    %21 = tpu.matmul %18, %20, %cst_22 {dimension_numbers = #tpu.dot_dimension_numbers<[1], [0], [0], [1], [0, 0, 1, 1], [], []>} : vector<16x256xf32>, vector<256x64xf32>, vector<16x64xf32> -> vector<16x64xf32>
    %22 = arith.addf %17, %21 : vector<16x64xf32>
    %c1_23 = arith.constant 1 : index
    %c0_24 = arith.constant 0 : index
    %23 = vector.load %arg13[%c1_23, %c0_24] : memref<18x256xf32, #tpu.memory_space<vmem>>, vector<16x256xf32>
    %c1_25 = arith.constant 1 : index
    %c0_26 = arith.constant 0 : index
    %c0_27 = arith.constant 0 : index
    %24 = vector.load %arg5[%c1_25, %c0_26, %c0_27] : memref<3x256x64xf32, #tpu.memory_space<vmem>>, vector<1x256x64xf32>
    %25 = vector.shape_cast %24 : vector<1x256x64xf32> to vector<256x64xf32>
    %cst_28 = arith.constant dense<0.000000e+00> : vector<16x64xf32>
    %26 = tpu.matmul %23, %25, %cst_28 {dimension_numbers = #tpu.dot_dimension_numbers<[1], [0], [0], [1], [0, 0, 1, 1], [], []>} : vector<16x256xf32>, vector<256x64xf32>, vector<16x64xf32> -> vector<16x64xf32>
    %27 = arith.addf %22, %26 : vector<16x64xf32>
    %c2 = arith.constant 2 : index
    %c0_29 = arith.constant 0 : index
    %28 = vector.load %arg13[%c2, %c0_29] : memref<18x256xf32, #tpu.memory_space<vmem>>, vector<16x256xf32>
    %c2_30 = arith.constant 2 : index
    %c0_31 = arith.constant 0 : index
    %c0_32 = arith.constant 0 : index
    %29 = vector.load %arg5[%c2_30, %c0_31, %c0_32] : memref<3x256x64xf32, #tpu.memory_space<vmem>>, vector<1x256x64xf32>
    %30 = vector.shape_cast %29 : vector<1x256x64xf32> to vector<256x64xf32>
    %cst_33 = arith.constant dense<0.000000e+00> : vector<16x64xf32>
    %31 = tpu.matmul %28, %30, %cst_33 {dimension_numbers = #tpu.dot_dimension_numbers<[1], [0], [0], [1], [0, 0, 1, 1], [], []>} : vector<16x256xf32>, vector<256x64xf32>, vector<16x64xf32> -> vector<16x64xf32>
    %32 = arith.addf %27, %31 : vector<16x64xf32>
    %c0_34 = arith.constant 0 : index
    %c0_35 = arith.constant 0 : index
    %33 = vector.load %arg6[%c0_34, %c0_35] : memref<1x64xf32, #tpu.memory_space<vmem>>, vector<1x64xf32>
    %34 = vector.broadcast %33 : vector<1x64xf32> to vector<16x64xf32>
    %35 = arith.mulf %32, %34 : vector<16x64xf32>
    %c0_36 = arith.constant 0 : index
    %c0_37 = arith.constant 0 : index
    %36 = vector.load %arg7[%c0_36, %c0_37] : memref<1x64xf32, #tpu.memory_space<vmem>>, vector<1x64xf32>
    %37 = vector.broadcast %36 : vector<1x64xf32> to vector<16x64xf32>
    %38 = arith.addf %35, %37 : vector<16x64xf32>
    %cst_38 = arith.constant 0.000000e+00 : f32
    %39 = vector.broadcast %cst_38 : f32 to vector<16x64xf32>
    %40 = arith.maximumf %38, %39 : vector<16x64xf32>
    %c1_39 = arith.constant 1 : index
    %c0_40 = arith.constant 0 : index
    %41 = vector.load %arg14[%c1_39, %c0_40] : memref<18x64xf32, #tpu.memory_space<vmem>>, vector<16x64xf32>
    tpu.vector_store %arg14[%c1_39, %c0_40], %40 {strides = array<i32>} : memref<18x64xf32, #tpu.memory_space<vmem>>, vector<16x64xf32>,
    %cst_41 = arith.constant 0.000000e+00 : f32
    %42 = vector.broadcast %cst_41 : f32 to vector<16x64xf32>
    %c0_42 = arith.constant 0 : index
    %c0_43 = arith.constant 0 : index
    %43 = vector.load %arg14[%c0_42, %c0_43] : memref<18x64xf32, #tpu.memory_space<vmem>>, vector<16x64xf32>
    %c0_44 = arith.constant 0 : index
    %c0_45 = arith.constant 0 : index
    %c0_46 = arith.constant 0 : index
    %44 = vector.load %arg8[%c0_44, %c0_45, %c0_46] : memref<3x64x64xf32, #tpu.memory_space<vmem>>, vector<1x64x64xf32>
    %45 = vector.shape_cast %44 : vector<1x64x64xf32> to vector<64x64xf32>
    %cst_47 = arith.constant dense<0.000000e+00> : vector<16x64xf32>
    %46 = tpu.matmul %43, %45, %cst_47 {dimension_numbers = #tpu.dot_dimension_numbers<[1], [0], [0], [1], [0, 0, 1, 1], [], []>} : vector<16x64xf32>, vector<64x64xf32>, vector<16x64xf32> -> vector<16x64xf32>
    %47 = arith.addf %42, %46 : vector<16x64xf32>
    %c1_48 = arith.constant 1 : index
    %c0_49 = arith.constant 0 : index
    %48 = vector.load %arg14[%c1_48, %c0_49] : memref<18x64xf32, #tpu.memory_space<vmem>>, vector<16x64xf32>
    %c1_50 = arith.constant 1 : index
    %c0_51 = arith.constant 0 : index
    %c0_52 = arith.constant 0 : index
    %49 = vector.load %arg8[%c1_50, %c0_51, %c0_52] : memref<3x64x64xf32, #tpu.memory_space<vmem>>, vector<1x64x64xf32>
    %50 = vector.shape_cast %49 : vector<1x64x64xf32> to vector<64x64xf32>
    %cst_53 = arith.constant dense<0.000000e+00> : vector<16x64xf32>
    %51 = tpu.matmul %48, %50, %cst_53 {dimension_numbers = #tpu.dot_dimension_numbers<[1], [0], [0], [1], [0, 0, 1, 1], [], []>} : vector<16x64xf32>, vector<64x64xf32>, vector<16x64xf32> -> vector<16x64xf32>
    %52 = arith.addf %47, %51 : vector<16x64xf32>
    %c2_54 = arith.constant 2 : index
    %c0_55 = arith.constant 0 : index
    %53 = vector.load %arg14[%c2_54, %c0_55] : memref<18x64xf32, #tpu.memory_space<vmem>>, vector<16x64xf32>
    %c2_56 = arith.constant 2 : index
    %c0_57 = arith.constant 0 : index
    %c0_58 = arith.constant 0 : index
    %54 = vector.load %arg8[%c2_56, %c0_57, %c0_58] : memref<3x64x64xf32, #tpu.memory_space<vmem>>, vector<1x64x64xf32>
    %55 = vector.shape_cast %54 : vector<1x64x64xf32> to vector<64x64xf32>
    %cst_59 = arith.constant dense<0.000000e+00> : vector<16x64xf32>
    %56 = tpu.matmul %53, %55, %cst_59 {dimension_numbers = #tpu.dot_dimension_numbers<[1], [0], [0], [1], [0, 0, 1, 1], [], []>} : vector<16x64xf32>, vector<64x64xf32>, vector<16x64xf32> -> vector<16x64xf32>
    %57 = arith.addf %52, %56 : vector<16x64xf32>
    %c0_60 = arith.constant 0 : index
    %c0_61 = arith.constant 0 : index
    %58 = vector.load %arg9[%c0_60, %c0_61] : memref<1x64xf32, #tpu.memory_space<vmem>>, vector<1x64xf32>
    %59 = vector.broadcast %58 : vector<1x64xf32> to vector<16x64xf32>
    %60 = arith.mulf %57, %59 : vector<16x64xf32>
    %c0_62 = arith.constant 0 : index
    %c0_63 = arith.constant 0 : index
    %61 = vector.load %arg10[%c0_62, %c0_63] : memref<1x64xf32, #tpu.memory_space<vmem>>, vector<1x64xf32>
    %62 = vector.broadcast %61 : vector<1x64xf32> to vector<16x64xf32>
    %63 = arith.addf %60, %62 : vector<16x64xf32>
    %cst_64 = arith.constant 0.000000e+00 : f32
    %64 = vector.broadcast %cst_64 : f32 to vector<16x64xf32>
    %65 = arith.maximumf %63, %64 : vector<16x64xf32>
    %c1_65 = arith.constant 1 : index
    %c0_66 = arith.constant 0 : index
    %66 = vector.load %arg14[%c1_65, %c0_66] : memref<18x64xf32, #tpu.memory_space<vmem>>, vector<16x64xf32>
    tpu.vector_store %arg14[%c1_65, %c0_66], %65 {strides = array<i32>} : memref<18x64xf32, #tpu.memory_space<vmem>>, vector<16x64xf32>,
    %cst_67 = arith.constant 0.000000e+00 : f32
    %67 = vector.broadcast %cst_67 : f32 to vector<16x256xf32>
    %c0_68 = arith.constant 0 : index
    %c0_69 = arith.constant 0 : index
    %68 = vector.load %arg14[%c0_68, %c0_69] : memref<18x64xf32, #tpu.memory_space<vmem>>, vector<16x64xf32>
    %c0_70 = arith.constant 0 : index
    %c0_71 = arith.constant 0 : index
    %c0_72 = arith.constant 0 : index
    %69 = vector.load %arg11[%c0_70, %c0_71, %c0_72] : memref<3x64x256xf32, #tpu.memory_space<vmem>>, vector<1x64x256xf32>
    %70 = vector.shape_cast %69 : vector<1x64x256xf32> to vector<64x256xf32>
    %cst_73 = arith.constant dense<0.000000e+00> : vector<16x256xf32>
    %71 = tpu.matmul %68, %70, %cst_73 {dimension_numbers = #tpu.dot_dimension_numbers<[1], [0], [0], [1], [0, 0, 1, 1], [], []>} : vector<16x64xf32>, vector<64x256xf32>, vector<16x256xf32> -> vector<16x256xf32>
    %72 = arith.addf %67, %71 : vector<16x256xf32>
    %c1_74 = arith.constant 1 : index
    %c0_75 = arith.constant 0 : index
    %73 = vector.load %arg14[%c1_74, %c0_75] : memref<18x64xf32, #tpu.memory_space<vmem>>, vector<16x64xf32>
    %c1_76 = arith.constant 1 : index
    %c0_77 = arith.constant 0 : index
    %c0_78 = arith.constant 0 : index
    %74 = vector.load %arg11[%c1_76, %c0_77, %c0_78] : memref<3x64x256xf32, #tpu.memory_space<vmem>>, vector<1x64x256xf32>
    %75 = vector.shape_cast %74 : vector<1x64x256xf32> to vector<64x256xf32>
    %cst_79 = arith.constant dense<0.000000e+00> : vector<16x256xf32>
    %76 = tpu.matmul %73, %75, %cst_79 {dimension_numbers = #tpu.dot_dimension_numbers<[1], [0], [0], [1], [0, 0, 1, 1], [], []>} : vector<16x64xf32>, vector<64x256xf32>, vector<16x256xf32> -> vector<16x256xf32>
    %77 = arith.addf %72, %76 : vector<16x256xf32>
    %c2_80 = arith.constant 2 : index
    %c0_81 = arith.constant 0 : index
    %78 = vector.load %arg14[%c2_80, %c0_81] : memref<18x64xf32, #tpu.memory_space<vmem>>, vector<16x64xf32>
    %c2_82 = arith.constant 2 : index
    %c0_83 = arith.constant 0 : index
    %c0_84 = arith.constant 0 : index
    %79 = vector.load %arg11[%c2_82, %c0_83, %c0_84] : memref<3x64x256xf32, #tpu.memory_space<vmem>>, vector<1x64x256xf32>
    %80 = vector.shape_cast %79 : vector<1x64x256xf32> to vector<64x256xf32>
    %cst_85 = arith.constant dense<0.000000e+00> : vector<16x256xf32>
    %81 = tpu.matmul %78, %80, %cst_85 {dimension_numbers = #tpu.dot_dimension_numbers<[1], [0], [0], [1], [0, 0, 1, 1], [], []>} : vector<16x64xf32>, vector<64x256xf32>, vector<16x256xf32> -> vector<16x256xf32>
    %82 = arith.addf %77, %81 : vector<16x256xf32>
    %c0_86 = arith.constant 0 : index
    %c0_87 = arith.constant 0 : index
    %c0_88 = arith.constant 0 : index
    %83 = vector.load %arg2[%c0_86, %c0_87, %c0_88] : memref<1x16x256xf32, #tpu.memory_space<vmem>>, vector<1x16x256xf32>
    %84 = vector.shape_cast %83 : vector<1x16x256xf32> to vector<16x256xf32>
    %85 = arith.addf %82, %84 : vector<16x256xf32>
    %c0_89 = arith.constant 0 : index
    %c0_90 = arith.constant 0 : index
    %c0_91 = arith.constant 0 : index
    %86 = vector.load %arg12[%c0_89, %c0_90, %c0_91] : memref<1x16x256xf32, #tpu.memory_space<vmem>>, vector<1x16x256xf32>
    %87 = vector.shape_cast %86 : vector<1x16x256xf32> to vector<16x256xf32>
    %88 = vector.shape_cast %85 : vector<16x256xf32> to vector<1x16x256xf32>
    tpu.vector_store %arg12[%c0_89, %c0_90, %c0_91], %88 {strides = array<i32>} : memref<1x16x256xf32, #tpu.memory_space<vmem>>, vector<1x16x256xf32>,
    return
  }
  func.func @transform_0(%arg0: i32) -> (i32, i32, i32) {
    %c0_i32 = arith.constant 0 : i32
    %c0_i32_0 = arith.constant 0 : i32
    %c0_i32_1 = arith.constant 0 : i32
    return %arg0, %c0_i32, %c0_i32_0 : i32, i32, i32
  }
  func.func @transform_1(%arg0: i32) -> (i32, i32, i32) {
    %c0_i32 = arith.constant 0 : i32
    %c0_i32_0 = arith.constant 0 : i32
    %c0_i32_1 = arith.constant 0 : i32
    return %arg0, %c0_i32, %c0_i32_0 : i32, i32, i32
  }
  func.func @transform_2(%arg0: i32) -> (i32, i32) {
    %c0_i32 = arith.constant 0 : i32
    %c0_i32_0 = arith.constant 0 : i32
    %c0_i32_1 = arith.constant 0 : i32
    return %c0_i32, %c0_i32_0 : i32, i32
  }
  func.func @transform_3(%arg0: i32) -> (i32, i32) {
    %c0_i32 = arith.constant 0 : i32
    %c0_i32_0 = arith.constant 0 : i32
    %c0_i32_1 = arith.constant 0 : i32
    return %c0_i32, %c0_i32_0 : i32, i32
  }
  func.func @transform_4(%arg0: i32) -> (i32, i32, i32) {
    %c0_i32 = arith.constant 0 : i32
    %c0_i32_0 = arith.constant 0 : i32
    %c0_i32_1 = arith.constant 0 : i32
    %c0_i32_2 = arith.constant 0 : i32
    return %c0_i32, %c0_i32_0, %c0_i32_1 : i32, i32, i32
  }
  func.func @transform_5(%arg0: i32) -> (i32, i32) {
    %c0_i32 = arith.constant 0 : i32
    %c0_i32_0 = arith.constant 0 : i32
    %c0_i32_1 = arith.constant 0 : i32
    return %c0_i32, %c0_i32_0 : i32, i32
  }
  func.func @transform_6(%arg0: i32) -> (i32, i32) {
    %c0_i32 = arith.constant 0 : i32
    %c0_i32_0 = arith.constant 0 : i32
    %c0_i32_1 = arith.constant 0 : i32
    return %c0_i32, %c0_i32_0 : i32, i32
  }
  func.func @transform_7(%arg0: i32) -> (i32, i32, i32) {
    %c0_i32 = arith.constant 0 : i32
    %c0_i32_0 = arith.constant 0 : i32
    %c0_i32_1 = arith.constant 0 : i32
    %c0_i32_2 = arith.constant 0 : i32
    return %c0_i32, %c0_i32_0, %c0_i32_1 : i32, i32, i32
  }
  func.func @transform_8(%arg0: i32) -> (i32, i32) {
    %c0_i32 = arith.constant 0 : i32
    %c0_i32_0 = arith.constant 0 : i32
    %c0_i32_1 = arith.constant 0 : i32
    return %c0_i32, %c0_i32_0 : i32, i32
  }
  func.func @transform_9(%arg0: i32) -> (i32, i32) {
    %c0_i32 = arith.constant 0 : i32
    %c0_i32_0 = arith.constant 0 : i32
    %c0_i32_1 = arith.constant 0 : i32
    return %c0_i32, %c0_i32_0 : i32, i32
  }
  func.func @transform_10(%arg0: i32) -> (i32, i32, i32) {
    %c0_i32 = arith.constant 0 : i32
    %c0_i32_0 = arith.constant 0 : i32
    %c0_i32_1 = arith.constant 0 : i32
    %c0_i32_2 = arith.constant 0 : i32
    return %c0_i32, %c0_i32_0, %c0_i32_1 : i32, i32, i32
  }
  func.func @transform_11(%arg0: i32) -> (i32, i32, i32) {
    %c0_i32 = arith.constant 0 : i32
    %c0_i32_0 = arith.constant 0 : i32
    %c0_i32_1 = arith.constant 0 : i32
    return %arg0, %c0_i32, %c0_i32_0 : i32, i32, i32
  }
}

</mosaic_0001>

<bundles_post_ra>
// kernel: tile.33
= control target key start
LH: loop header
LB: loop body
LE: loop exit
PB: predicated region body
PF: predicated region fallthrough
CT: control target
= control target key end

     0   :  { %s28_s0 = inlined_call_operand.vmem [shape: f32[16], index: 0, kind: input, shape index: {}]   ;;  %s29_s1 = inlined_call_operand.vmem [shape: f32[16,16], index: 1, kind: output, shape index: {}]  }
   0x1   :  { %v4_v0 = vld [vmem:[%s28_s0] ss:$0 sm:$0xff] }
   0x2   :  { %5 = vst [vmem:[%s29_s1] sm:$0xff] %v4_v0 }
   0x3   :  { %8 = vst [vmem:[%s29_s1 + $0x8] sm:$0xff] %v4_v0 }

// kernel: tile.34
= control target key start
LH: loop header
LB: loop body
LE: loop exit
PB: predicated region body
PF: predicated region fallthrough
CT: control target
= control target key end

     0   :  { %s7_s6 = smov 3  ;;  %s21_s9 = smov 3  ;;  %vm4_vm0 = vcmask 130048   ;;  %vm11_vm1 = vcmask 1048448   ;;  %vm18_vm2 = vcmask 917248   ;;  %vm25_vm3 = vcmask 786048   ;;  %s129_s0 = inlined_call_operand.vmem [shape: f32[16,16], index: 0, kind: input, shape index: {}]   ;;  %s130_s1 = inlined_call_operand.vmem [shape: f32[1,256], index: 1, kind: output, shape index: {}]  }
   0x1   :  { %v67_v0 = vld [vmem:[%s129_s0 + $0x7] ss:$8 sm:%s7_s6]   ;;  %s82_s10 = smov 112   ;;  %v69_v1 = vld [vmem:[%s129_s0 + $0x5] ss:$8 sm:%s21_s9]   ;;  %s83_s13 = smov 80  }
   0x2   :  { %9 = vrot.lane.b32.xlu0 %v67_v0, %s82_s10  ;;  %23 = vrot.lane.b32.xlu1 %v69_v1, %s83_s13  ;;  %s14_s14 = smov 3  ;;  %s28_s15 = smov 3  ;;  %vm32_vm4 = vcmask 654848   ;;  %vm39_vm5 = vcmask 523648   ;;  %vm46_vm6 = vcmask 392448   ;;  %vm53_vm7 = vcmask 261248  }
   0x3   :  { %s35_s16 = smov 3  ;;  %v68_v3 = vld [vmem:[%s129_s0 + $0x6] ss:$8 sm:%s14_s14]   ;;  %s84_s21 = smov 48   ;;  %v70_v4 = vld [vmem:[%s129_s0 + $0x4] ss:$8 sm:%s28_s15]  }
   0x4   :  { %v71_v2 = vld [vmem:[%s129_s0 + $0x3] ss:$8 sm:%s35_s16]   ;;  %s42_s24 = smov 3  ;;  %s85_s25 = smov 96  }
   0x5   :  { %37 = vrot.lane.b32.xlu2 %v71_v2, %s84_s21  ;;  %s86_s26 = smov 64   ;;  %s49_s27 = smov 3  ;;  %v72_v5 = vld [vmem:[%s129_s0 + $0x2] ss:$8 sm:%s42_s24]  }
   0x6   :  { %v73_v6 = vld [vmem:[%s129_s0 + $0x1] ss:$8 sm:%s49_s27]   ;;  %s87_s3 = smov 32   ;;  %s88_s4 = smov 16  }
   0x7   :  { %s2_s5 = smov 3 }
   0x8   :  { %v3_v7 = vld [vmem:[%s129_s0] ss:$8 sm:%s2_s5]  }
   0x9   :  { %5 = vst.msk [vmem:[#allocation0] ss:$8 sm:$0x3] %vm4_vm0, %v3_v7  }
   0xa   :  { %16 = vrot.lane.b32.xlu0 %v68_v3, %s85_s25  ;;  %30 = vrot.lane.b32.xlu1 %v70_v4, %s86_s26 }
   0xd   :  { %44 = vrot.lane.b32.xlu2 %v72_v5, %s87_s3 }
  0x12   :  { %51 = vrot.lane.b32.xlu0 %v73_v6, %s88_s4 }
  0x5f   :  { %v38_v8 = vpop.permute.xlu2 %37  }
  0x67   :  { %v45_v9 = vpop.permute.xlu2 %44  }
  0x74   :  { %v10_v10 = vpop.permute.xlu0 %9   ;;  %v24_v11 = vpop.permute.xlu1 %23  }
  0x75   :  { %12 = vst.msk [vmem:[#allocation0] ss:$8 sm:$0x3] %vm11_vm1, %v10_v10  }
  0x7c   :  { %v17_v12 = vpop.permute.xlu0 %16   ;;  %v31_v13 = vpop.permute.xlu1 %30  }
  0x7d   :  { %19 = vst.msk [vmem:[#allocation0] ss:$8 sm:$0x3] %vm18_vm2, %v17_v12  }
  0x7e   :  { %26 = vst.msk [vmem:[#allocation0] ss:$8 sm:$0x3] %vm25_vm3, %v24_v11  }
  0x7f   :  { %33 = vst.msk [vmem:[#allocation0] ss:$8 sm:$0x3] %vm32_vm4, %v31_v13  }
  0x80   :  { %40 = vst.msk [vmem:[#allocation0] ss:$8 sm:$0x3] %vm39_vm5, %v38_v8  }
  0x81   :  { %47 = vst.msk [vmem:[#allocation0] ss:$8 sm:$0x3] %vm46_vm6, %v45_v9  }
  0x84   :  { %v52_v14 = vpop.permute.xlu0 %51  }
  0x85   :  { %54 = vst.msk [vmem:[#allocation0] ss:$8 sm:$0x3] %vm53_vm7, %v52_v14  }
  0x8c   :  { %v57_v15 = vld [vmem:[#allocation0] sm:$0x1]  ;;  %v62_v16 = vld [vmem:[#allocation0 + $0x8] sm:$0x1] }
  0x8d   :  { %60 = vst [vmem:[%s130_s1] sm:$0x1] %v57_v15 }
  0x8e   :  { %74 = vst [vmem:[%s130_s1 + $0x1] sm:$0x1] %v62_v16 }

// kernel: tile.43
= control target key start
LH: loop header
LB: loop body
LE: loop exit
PB: predicated region body
PF: predicated region fallthrough
CT: control target
= control target key end

     0   :  { %s28_s0 = inlined_call_operand.vmem [shape: f32[4], index: 0, kind: input, shape index: {}]   ;;  %s29_s1 = inlined_call_operand.vmem [shape: f32[16,4], index: 1, kind: output, shape index: {}]  }
   0x1   :  { %v4_v0 = vld [vmem:[%s28_s0] ss:$0 sm:$0xff] }
   0x2   :  { %5 = vst [vmem:[%s29_s1] sm:$0xff] %v4_v0 }
   0x3   :  { %8 = vst [vmem:[%s29_s1 + $0x8] sm:$0xff] %v4_v0 }

// kernel: tile.44
= control target key start
LH: loop header
LB: loop body
LE: loop exit
PB: predicated region body
PF: predicated region fallthrough
CT: control target
= control target key end

     0   :  { %s131_s10 = smov 60   ;;  %s132_s11 = smov 52   ;;  %vm3_vm0 = vcmask 31744   ;;  %vm9_vm1 = vcmask 523744   ;;  %vm15_vm2 = vcmask 490944   ;;  %vm21_vm3 = vcmask 458144   ;;  %s207_s0 = inlined_call_operand.vmem [shape: f32[16,4], index: 0, kind: input, shape index: {}]   ;;  %s208_s1 = inlined_call_operand.vmem [shape: f32[1,64], index: 1, kind: output, shape index: {}]  }
   0x1   :  { %v101_v0 = vld [vmem:[%s207_s0 + $0xf] sm:$0x1]   ;;  %v103_v1 = vld [vmem:[%s207_s0 + $0xd] sm:$0x1]   ;;  %v105_v2 = vld [vmem:[%s207_s0 + $0xb] sm:$0x1]  }
   0x2   :  { %7 = vrot.lane.b32.xlu0 %v101_v0, %s131_s10  ;;  %19 = vrot.lane.b32.xlu1 %v103_v1, %s132_s11  ;;  %s133_s14 = smov 44   ;;  %v102_v3 = vld [vmem:[%s207_s0 + $0xe] sm:$0x1]   ;;  %v104_v4 = vld [vmem:[%s207_s0 + $0xc] sm:$0x1]   ;;  %s134_s19 = smov 56  }
   0x3   :  { %31 = vrot.lane.b32.xlu2 %v105_v2, %s133_s14  ;;  %s135_s20 = smov 48   ;;  %v106_v5 = vld [vmem:[%s207_s0 + $0xa] sm:$0x1]   ;;  %s136_s23 = smov 40   ;;  %v107_v6 = vld [vmem:[%s207_s0 + $0x9] sm:$0x1]  }
   0x4   :  { %v108_v7 = vld [vmem:[%s207_s0 + $0x8] sm:$0x1]   ;;  %s137_s28 = smov 36   ;;  %s138_s29 = smov 32   ;;  %v109_v8 = vld [vmem:[%s207_s0 + $0x7] sm:$0x1]  }
   0x5   :  { %s139_s3 = smov 28   ;;  %v110_v9 = vld [vmem:[%s207_s0 + $0x6] sm:$0x1]   ;;  %v111_v10 = vld [vmem:[%s207_s0 + $0x5] sm:$0x1]   ;;  %s140_s8 = smov 24  }
   0x6   :  { %s141_s9 = smov 20   ;;  %v112_v11 = vld [vmem:[%s207_s0 + $0x4] sm:$0x1]   ;;  %s142_s12 = smov 16   ;;  %v113_v12 = vld [vmem:[%s207_s0 + $0x3] sm:$0x1]  }
   0x7   :  { %v114_v13 = vld [vmem:[%s207_s0 + $0x2] sm:$0x1]   ;;  %s143_s17 = smov 12   ;;  %s144_s18 = smov 8   ;;  %v115_v14 = vld [vmem:[%s207_s0 + $0x1] sm:$0x1]  }
   0x8   :  { %s145_s21 = smov 4   ;;  %v2_v15 = vld [vmem:[%s207_s0] sm:$0x1]   ;;  %vm27_vm4 = vcmask 425344   ;;  %vm33_vm5 = vcmask 392544   ;;  %vm39_vm6 = vcmask 359744  }
   0x9   :  { %4 = vst.msk [vmem:[#allocation0] sm:$0x1] %vm3_vm0, %v2_v15   ;;  %vm45_vm7 = vcmask 326944   ;;  %vm51_vm8 = vcmask 294144   ;;  %vm57_vm9 = vcmask 261344   ;;  %vm63_vm10 = vcmask 228544  }
   0xa   :  { %13 = vrot.lane.b32.xlu0 %v102_v3, %s134_s19  ;;  %25 = vrot.lane.b32.xlu1 %v104_v4, %s135_s20  ;;  %vm69_vm11 = vcmask 195744   ;;  %vm75_vm12 = vcmask 162944   ;;  %vm81_vm13 = vcmask 130144   ;;  %vm87_vm14 = vcmask 97344  }
   0xb   :  { %37 = vrot.lane.b32.xlu2 %v106_v5, %s136_s23  ;;  %vm93_vm15 = vcmask 64544  }
  0x12   :  { %43 = vrot.lane.b32.xlu0 %v107_v6, %s137_s28  ;;  %49 = vrot.lane.b32.xlu1 %v108_v7, %s138_s29 }
  0x13   :  { %55 = vrot.lane.b32.xlu2 %v109_v8, %s139_s3 }
  0x1a   :  { %61 = vrot.lane.b32.xlu0 %v110_v9, %s140_s8  ;;  %67 = vrot.lane.b32.xlu1 %v111_v10, %s141_s9 }
  0x1b   :  { %73 = vrot.lane.b32.xlu2 %v112_v11, %s142_s12 }
  0x22   :  { %79 = vrot.lane.b32.xlu0 %v113_v12, %s143_s17  ;;  %85 = vrot.lane.b32.xlu1 %v114_v13, %s144_s18 }
  0x23   :  { %91 = vrot.lane.b32.xlu2 %v115_v14, %s145_s21 }
  0x5d   :  { %v32_v16 = vpop.permute.xlu2 %31  }
  0x65   :  { %v38_v17 = vpop.permute.xlu2 %37  }
  0x6d   :  { %v56_v18 = vpop.permute.xlu2 %55  }
  0x74   :  { %v8_v19 = vpop.permute.xlu0 %7   ;;  %v20_v20 = vpop.permute.xlu1 %19  }
  0x75   :  { %10 = vst.msk [vmem:[#allocation0] sm:$0x1] %vm9_vm1, %v8_v19   ;;  %v74_v21 = vpop.permute.xlu2 %73  }
  0x7c   :  { %v14_v22 = vpop.permute.xlu0 %13   ;;  %v26_v23 = vpop.permute.xlu1 %25  }
  0x7d   :  { %16 = vst.msk [vmem:[#allocation0] sm:$0x1] %vm15_vm2, %v14_v22   ;;  %v92_v24 = vpop.permute.xlu2 %91  }
  0x7e   :  { %22 = vst.msk [vmem:[#allocation0] sm:$0x1] %vm21_vm3, %v20_v20  }
  0x7f   :  { %28 = vst.msk [vmem:[#allocation0] sm:$0x1] %vm27_vm4, %v26_v23  }
  0x80   :  { %34 = vst.msk [vmem:[#allocation0] sm:$0x1] %vm33_vm5, %v32_v16  }
  0x81   :  { %40 = vst.msk [vmem:[#allocation0] sm:$0x1] %vm39_vm6, %v38_v17  }
  0x84   :  { %v44_v25 = vpop.permute.xlu0 %43   ;;  %v50_v26 = vpop.permute.xlu1 %49  }
  0x85   :  { %46 = vst.msk [vmem:[#allocation0] sm:$0x1] %vm45_vm7, %v44_v25  }
  0x86   :  { %52 = vst.msk [vmem:[#allocation0] sm:$0x1] %vm51_vm8, %v50_v26  }
  0x87   :  { %58 = vst.msk [vmem:[#allocation0] sm:$0x1] %vm57_vm9, %v56_v18  }
  0x8c   :  { %v62_v27 = vpop.permute.xlu0 %61   ;;  %v68_v28 = vpop.permute.xlu1 %67  }
  0x8d   :  { %64 = vst.msk [vmem:[#allocation0] sm:$0x1] %vm63_vm10, %v62_v27  }
  0x8e   :  { %70 = vst.msk [vmem:[#allocation0] sm:$0x1] %vm69_vm11, %v68_v28  }
  0x8f   :  { %76 = vst.msk [vmem:[#allocation0] sm:$0x1] %vm75_vm12, %v74_v21  }
  0x94   :  { %v80_v29 = vpop.permute.xlu0 %79   ;;  %v86_v30 = vpop.permute.xlu1 %85  }
  0x95   :  { %82 = vst.msk [vmem:[#allocation0] sm:$0x1] %vm81_vm13, %v80_v29  }
  0x96   :  { %88 = vst.msk [vmem:[#allocation0] sm:$0x1] %vm87_vm14, %v86_v30  }
  0x97   :  { %94 = vst.msk [vmem:[#allocation0] sm:$0x1] %vm93_vm15, %v92_v24  }
  0x9e   :  { %v97_v31 = vld [vmem:[#allocation0] sm:$0x1] }
  0x9f   :  { %100 = vst [vmem:[%s208_s1] sm:$0x1] %v97_v31 }

// kernel: irev_unit_forward.1
= control target key start
LH: loop header
LB: loop body
LE: loop exit
PB: predicated region body
PF: predicated region fallthrough
CT: control target
= control target key end

     0   :  { %s1445_s17 = smov 0   ;;  %s2048_s0 = inlined_call_operand.vmem [shape: f32[2,16,256], index: 0, kind: input, shape index: {}]   ;;  %s2049_s1 = inlined_call_operand.vmem [shape: f32[2,16,256], index: 1, kind: input, shape index: {}]   ;;  %s2050_s2 = inlined_call_operand.vmem [shape: f32[1,256], index: 2, kind: input, shape index: {}]   ;;  %s2051_s3 = inlined_call_operand.vmem [shape: f32[1,256], index: 3, kind: input, shape index: {}]   ;;  %s2052_s4 = inlined_call_operand.vmem [shape: f32[3,256,64], index: 4, kind: input, shape index: {}]   ;;  %s2053_s5 = inlined_call_operand.vmem [shape: f32[1,64], index: 5, kind: input, shape index: {}]   ;;  %s2054_s6 = inlined_call_operand.vmem [shape: f32[1,64], index: 6, kind: input, shape index: {}]   ;;  %s2055_s7 = inlined_call_operand.vmem [shape: f32[3,64,64], index: 7, kind: input, shape index: {}]   ;;  %s2056_s8 = inlined_call_operand.vmem [shape: f32[1,64], index: 8, kind: input, shape index: {}]   ;;  %s2057_s9 = inlined_call_operand.vmem [shape: f32[1,64], index: 9, kind: input, shape index: {}]   ;;  %s2058_s10 = inlined_call_operand.vmem [shape: f32[3,64,256], index: 10, kind: input, shape index: {}]   ;;  %s2059_s11 = inlined_call_operand.vmem [shape: f32[2,16,256], index: 11, kind: output, shape index: {}]  }
   0x1 LB: > { %s1209_s18 = sadd.s32 4294967295, %s1382_s17   ;;  %p1213_p0 = scmp.ge.s32.totalorder %s1382_s17, 1  ;;  %s1382_s17 = sphi %s1445_s17, %s21_s17  }
   0x2   : > { %p347_p1 = scmp.lt.s32.totalorder %s1382_s17, 3 }
   0x4   : > { %p348_p2 = pnand %p1213_p0, %p347_p1 }
   0x5   : > { %p1529_p3 = scmp.lt.s32.totalorder (!%p348_p2), %s1209_s18, 1 }
   0x6   : > { %351 = sbr.rel (%p348_p2) target bundleno = 545 (0x221), region = 64 }
   0xb   : > { %v1235_v0 = vld [vmem:[%s2052_s4 + $0x178] sm:$0xff]  ;;  %v1234_v2 = vld [vmem:[%s2052_s4 + $0x170] sm:$0xff]  ;;  %v407_v3 = vlaneseq  ;;  %v1233_v5 = vld [vmem:[%s2052_s4 + $0x168] sm:$0xff]  ;;  %v1384_v7 = vmov 0.0   ;;  %s2062_s18 = smov (!%p1529_p3, %s1209_s18), 1  ;;  %vm451_vm1 = vcmask 1040384  }
   0xc   : > { %v1251_v1 = vld [vmem:[%s2052_s4 + $0x1f8] sm:$0xff]  ;;  %564 = vmatpush.msra.mxu0 %v1235_v0  ;;  %v1250_v4 = vld [vmem:[%s2052_s4 + $0x1f0] sm:$0xff]  ;;  %v1249_v6 = vld [vmem:[%s2052_s4 + $0x1e8] sm:$0xff]  ;;  %s1585_s13 = sshll.u32 %s2062_s18, 5  ;;  %vm549_vm2 = vcmask 1046528   ;;  %vm697_vm3 = vcmask 1045504  }
   0xd   : > { %587 = vmatpush.msra.mxu1 %v1251_v1  ;;  %vm409_vm0 = vcmp.lt.s32.totalorder %v407_v3, 256  ;;  %v1232_v8 = vld [vmem:[%s2052_s4 + $0x160] sm:$0xff]  ;;  %v489_v10 = vld [vmem:[%s2052_s4 + $0x78] sm:$0xff]  ;;  %v488_v11 = vld [vmem:[%s2052_s4 + $0x70] sm:$0xff]  ;;  %s396_s12 = scalar_lea.vmem %s2048_s0, %s1585_s13  ;;  %vm416_vm4 = vcmask 516096   ;;  %vm774_vm5 = vcmask 523264   ;;  %s401_s19 = scalar_lea.vmem %s2049_s1, %s1585_s13 }
   0xe   : > { %565 = vmatpush.msra.mxu0 %v1234_v2  ;;  %411 = vst.msk [vmem:[#allocation2] ss:$8 sm:$0x3] %vm409_vm0, %v1384_v7  ;;  %v1248_v9 = vld [vmem:[%s2052_s4 + $0x1e0] sm:$0xff]  ;;  %v505_v12 = vld [vmem:[%s2052_s4 + $0xf8] sm:$0xff]  ;;  %610 = vmatpush.msra.mxu2 %v489_v10  ;;  %v504_v15 = vld [vmem:[%s2052_s4 + $0xf0] sm:$0xff]  ;;  %s406_s22 = scalar_lea.vmem %s2059_s11, %s1585_s13 }
   0xf   : > { %588 = vmatpush.msra.mxu1 %v1250_v4  ;;  %414 = vst.msk [vmem:[#allocation2 + $0x21] ss:$8 sm:$0x3] %vm409_vm0, %v1384_v7  ;;  %v1231_v13 = vld [vmem:[%s2052_s4 + $0x158] sm:$0xff]  ;;  %633 = vmatpush.msra.mxu3 %v505_v12  ;;  %v487_v16 = vld [vmem:[%s2052_s4 + $0x68] sm:$0xff]  ;;  %v1230_v17 = vld [vmem:[%s2052_s4 + $0x150] sm:$0xff] }
  0x10   : > { %566 = vmatpush.msra.mxu0 %v1233_v5  ;;  %v1247_v14 = vld [vmem:[%s2052_s4 + $0x1d8] sm:$0xff]  ;;  %v1246_v18 = vld [vmem:[%s2052_s4 + $0x1d0] sm:$0xff]  ;;  %611 = vmatpush.msra.mxu2 %v488_v11  ;;  %v503_v19 = vld [vmem:[%s2052_s4 + $0xe8] sm:$0xff]  ;;  %417 = vst.msk [vmem:[#allocation3] sm:$0x1] %vm416_vm4, %v1384_v7 }
  0x11   : > { %589 = vmatpush.msra.mxu1 %v1249_v6  ;;  %634 = vmatpush.msra.mxu3 %v504_v15  ;;  %v486_v20 = vld [vmem:[%s2052_s4 + $0x60] sm:$0xff]  ;;  %v1229_v22 = vld [vmem:[%s2052_s4 + $0x148] sm:$0xff]  ;;  %v485_v24 = vld [vmem:[%s2052_s4 + $0x58] sm:$0xff]  ;;  %418 = vst.msk [vmem:[#allocation3 + $0x11] sm:$0x1] %vm416_vm4, %v1384_v7 }
  0x12   : > { %567 = vmatpush.msra.mxu0 %v1232_v8  ;;  %v502_v21 = vld [vmem:[%s2052_s4 + $0xe0] sm:$0xff]  ;;  %v1245_v23 = vld [vmem:[%s2052_s4 + $0x1c8] sm:$0xff]  ;;  %612 = vmatpush.msra.mxu2 %v487_v16  ;;  %v501_v25 = vld [vmem:[%s2052_s4 + $0xd8] sm:$0xff] }
  0x13   : > { %590 = vmatpush.msra.mxu1 %v1248_v9  ;;  %635 = vmatpush.msra.mxu3 %v503_v19  ;;  %v1228_v26 = vld [vmem:[%s2052_s4 + $0x140] sm:$0xff]  ;;  %v484_v28 = vld [vmem:[%s2052_s4 + $0x50] sm:$0xff]  ;;  %v1227_v30 = vld [vmem:[%s2052_s4 + $0x138] sm:$0xff] }
  0x14   : > { %568 = vmatpush.msra.mxu0 %v1231_v13  ;;  %v1244_v27 = vld [vmem:[%s2052_s4 + $0x1c0] sm:$0xff]  ;;  %613 = vmatpush.msra.mxu2 %v486_v20  ;;  %v500_v29 = vld [vmem:[%s2052_s4 + $0xd0] sm:$0xff]  ;;  %v1243_v31 = vld [vmem:[%s2052_s4 + $0x1b8] sm:$0xff] }
  0x15   : > { %591 = vmatpush.msra.mxu1 %v1247_v14  ;;  %636 = vmatpush.msra.mxu3 %v502_v21  ;;  %v483_v32 = vld [vmem:[%s2052_s4 + $0x48] sm:$0xff]  ;;  %v1226_v34 = vld [vmem:[%s2052_s4 + $0x130] sm:$0xff]  ;;  %v482_v36 = vld [vmem:[%s2052_s4 + $0x40] sm:$0xff] }
  0x16   : > { %569 = vmatpush.msra.mxu0 %v1230_v17  ;;  %614 = vmatpush.msra.mxu2 %v485_v24  ;;  %v499_v33 = vld [vmem:[%s2052_s4 + $0xc8] sm:$0xff]  ;;  %v1242_v35 = vld [vmem:[%s2052_s4 + $0x1b0] sm:$0xff]  ;;  %v498_v37 = vld [vmem:[%s2052_s4 + $0xc0] sm:$0xff] }
  0x17   : > { %592 = vmatpush.msra.mxu1 %v1246_v18  ;;  %637 = vmatpush.msra.mxu3 %v501_v25  ;;  %v1225_v38 = vld [vmem:[%s2052_s4 + $0x128] sm:$0xff]  ;;  %v481_v40 = vld [vmem:[%s2052_s4 + $0x38] sm:$0xff]  ;;  %v1224_v42 = vld [vmem:[%s2052_s4 + $0x120] sm:$0xff] }
  0x18   : > { %570 = vmatpush.msra.mxu0 %v1229_v22  ;;  %615 = vmatpush.msra.mxu2 %v484_v28  ;;  %v1241_v39 = vld [vmem:[%s2052_s4 + $0x1a8] sm:$0xff]  ;;  %v497_v41 = vld [vmem:[%s2052_s4 + $0xb8] sm:$0xff]  ;;  %v1240_v43 = vld [vmem:[%s2052_s4 + $0x1a0] sm:$0xff] }
  0x19   : > { %593 = vmatpush.msra.mxu1 %v1245_v23  ;;  %638 = vmatpush.msra.mxu3 %v500_v29  ;;  %v480_v44 = vld [vmem:[%s2052_s4 + $0x30] sm:$0xff]  ;;  %v1223_v46 = vld [vmem:[%s2052_s4 + $0x118] sm:$0xff]  ;;  %v479_v50 = vld [vmem:[%s2052_s4 + $0x28] sm:$0xff] }
  0x1a   : > { %571 = vmatpush.msra.mxu0 %v1228_v26  ;;  %616 = vmatpush.msra.mxu2 %v483_v32  ;;  %v496_v45 = vld [vmem:[%s2052_s4 + $0xb0] sm:$0xff]  ;;  %v1239_v47 = vld [vmem:[%s2052_s4 + $0x198] sm:$0xff]  ;;  %v495_v51 = vld [vmem:[%s2052_s4 + $0xa8] sm:$0xff] }
  0x1b   : > { %594 = vmatpush.msra.mxu1 %v1244_v27  ;;  %639 = vmatpush.msra.mxu3 %v499_v33  ;;  %v1222_v48 = vld [vmem:[%s2052_s4 + $0x110] sm:$0xff]  ;;  %v1221_v52 = vld [vmem:[%s2052_s4 + $0x108] sm:$0xff]  ;;  %v478_v53 = vld [vmem:[%s2052_s4 + $0x20] sm:$0xff] }
  0x1c   : > { %572 = vmatpush.msra.mxu0 %v1227_v30  ;;  %617 = vmatpush.msra.mxu2 %v482_v36  ;;  %v1238_v49 = vld [vmem:[%s2052_s4 + $0x190] sm:$0xff]  ;;  %v494_v54 = vld [vmem:[%s2052_s4 + $0xa0] sm:$0xff]  ;;  %v1237_v58 = vld [vmem:[%s2052_s4 + $0x188] sm:$0xff] }
  0x1d   : > { %595 = vmatpush.msra.mxu1 %v1243_v31  ;;  %640 = vmatpush.msra.mxu3 %v498_v37  ;;  %v419_v55 = vld [vmem:[%s396_s12] sm:$0xff]  ;;  %v421_v56 = vld [vmem:[%s396_s12 + $0x10] sm:$0xff]  ;;  %v477_v59 = vld [vmem:[%s2052_s4 + $0x18] sm:$0xff] }
  0x1e   : > { %573 = vmatpush.msra.mxu0 %v1226_v34  ;;  %618 = vmatpush.msra.mxu2 %v481_v40  ;;  %v423_v57 = vld [vmem:[%s2050_s2] sm:$0x3]  ;;  %v493_v63 = vld [vmem:[%s2052_s4 + $0x98] sm:$0xff]  ;;  %v420_v1 = vld [vmem:[%s396_s12 + $0x8] sm:$0xff] }
  0x1f   : > { %596 = vmatpush.msra.mxu1 %v1242_v35  ;;  %641 = vmatpush.msra.mxu3 %v497_v41  ;;  %v425_v60 = vperm.slane %v423_v57, 0  ;;  %v433_v61 = vld [vmem:[%s2051_s3] sm:$0x3]  ;;  %v426_v62 = vperm.slane %v423_v57, 1  ;;  %v422_v2 = vld [vmem:[%s396_s12 + $0x18] sm:$0xff]  ;;  %v476_v13 = vld [vmem:[%s2052_s4 + $0x10] sm:$0xff] }
  0x20   : > { %574 = vmatpush.msra.mxu0 %v1225_v38  ;;  %619 = vmatpush.msra.mxu2 %v480_v44  ;;  %v435_v0 = vperm.slane %v433_v61, 0  ;;  %v436_v3 = vperm.slane %v433_v61, 1  ;;  %v1220_v4 = vld [vmem:[%s2052_s4 + $0x100] sm:$0xff]  ;;  %v1267_v10 = vld [vmem:[%s2052_s4 + $0x278] sm:$0xff]  ;;  %v492_v14 = vld [vmem:[%s2052_s4 + $0x90] sm:$0xff] }
  0x21   : > { %597 = vmatpush.msra.mxu1 %v1241_v39  ;;  %642 = vmatpush.msra.mxu3 %v496_v45  ;;  %v1236_v5 = vld [vmem:[%s2052_s4 + $0x180] sm:$0xff]  ;;  %v429_v6 = vmul.f32 %v425_v60, %v419_v55  ;;  %v431_v8 = vmul.f32 %v425_v60, %v421_v56  ;;  %v430_v9 = vmul.f32 %v426_v62, %v420_v1  ;;  %v1283_v11 = vld [vmem:[%s2052_s4 + $0x2f8] sm:$0xff]  ;;  %v1266_v18 = vld [vmem:[%s2052_s4 + $0x270] sm:$0xff] }
  0x22   : > { %575 = vmatpush.msra.mxu0 %v1224_v42  ;;  %620 = vmatpush.msra.mxu2 %v479_v50  ;;  %v432_v12 = vmul.f32 %v426_v62, %v422_v2  ;;  %v1282_v19 = vld [vmem:[%s2052_s4 + $0x2f0] sm:$0xff]  ;;  %v1265_v21 = vld [vmem:[%s2052_s4 + $0x268] sm:$0xff]  ;;  %v1264_v28 = vld [vmem:[%s2052_s4 + $0x260] sm:$0xff] }
  0x23   : > { %598 = vmatpush.msra.mxu1 %v1240_v43  ;;  %643 = vmatpush.msra.mxu3 %v495_v51  ;;  %v439_v15 = vadd.f32 %v435_v0, %v429_v6  ;;  %v441_v16 = vadd.f32 %v435_v0, %v431_v8  ;;  %v440_v17 = vadd.f32 %v436_v3, %v430_v9  ;;  %v475_v22 = vld [vmem:[%s2052_s4 + $0x8] sm:$0xff]  ;;  %v1280_v29 = vld [vmem:[%s2052_s4 + $0x2e0] sm:$0xff]  ;;  %v1263_v38 = vld [vmem:[%s2052_s4 + $0x258] sm:$0xff] }
  0x24   : > { %576 = vmatpush.msra.mxu0 %v1223_v46  ;;  %621 = vmatpush.msra.mxu2 %v478_v53  ;;  %v442_v20 = vadd.f32 %v436_v3, %v432_v12  ;;  %v491_v23 = vld [vmem:[%s2052_s4 + $0x88] sm:$0xff]  ;;  %v474_v31 = vld [vmem:[%s2052_s4] sm:$0xff]  ;;  %v1279_v39 = vld [vmem:[%s2052_s4 + $0x2d8] sm:$0xff] }
  0x25   : > { %599 = vmatpush.msra.mxu1 %v1239_v47  ;;  %644 = vmatpush.msra.mxu3 %v494_v54  ;;  %v443_v24 = vmax.f32 %v439_v15, 0.0  ;;  %v445_v25 = vmax.f32 %v441_v16, 0.0  ;;  %v444_v26 = vmax.f32 %v440_v17, 0.0  ;;  %v1281_v27 = vld [vmem:[%s2052_s4 + $0x2e8] sm:$0xff]  ;;  %v490_v34 = vld [vmem:[%s2052_s4 + $0x80] sm:$0xff]  ;;  %v1262_v40 = vld [vmem:[%s2052_s4 + $0x250] sm:$0xff] }
  0x26   : > { %577 = vmatpush.msra.mxu0 %v1222_v48  ;;  %622 = vmatpush.msra.mxu2 %v477_v59  ;;  %v446_v30 = vmax.f32 %v442_v20, 0.0  ;;  %v1278_v41 = vld [vmem:[%s2052_s4 + $0x2d0] sm:$0xff]  ;;  %v1261_v43 = vld [vmem:[%s2052_s4 + $0x248] sm:$0xff]  ;;  %v1260_v47 = vld [vmem:[%s2052_s4 + $0x240] sm:$0xff] }
  0x27   : > { %600 = vmatpush.msra.mxu1 %v1238_v49  ;;  %645 = vmatpush.msra.mxu3 %v493_v63  ;;  %v452_v32 = vrot.slane %v443_v24, 7  ;;  %v454_v33 = vrot.slane %v445_v25, 7  ;;  %v453_v35 = vrot.slane %v444_v26, 7  ;;  %v1277_v44 = vld [vmem:[%s2052_s4 + $0x2c8] sm:$0xff]  ;;  %v1276_v49 = vld [vmem:[%s2052_s4 + $0x2c0] sm:$0xff]  ;;  %v1275_v53 = vld [vmem:[%s2052_s4 + $0x2b8] sm:$0xff] }
  0x28   : > { %578 = vmatpush.msra.mxu0 %v1221_v52  ;;  %623 = vmatpush.msra.mxu2 %v476_v13  ;;  %v456_v36 = vrot.slane %v446_v30, 7  ;;  %v1259_v52 = vld [vmem:[%s2052_s4 + $0x238] sm:$0xff]  ;;  %v1258_v59 = vld [vmem:[%s2052_s4 + $0x230] sm:$0xff]  ;;  %v1257_v0 = vld [vmem:[%s2052_s4 + $0x228] sm:$0xff] }
  0x29   : > { %601 = vmatpush.msra.mxu1 %v1237_v58  ;;  %646 = vmatpush.msra.mxu3 %v492_v14  ;;  %v1694_v37 = vsel %vm451_vm1, %v452_v32, %v454_v33  ;;  %464 = vst [vmem:[#allocation2] sm:$0xfe] %v452_v32  ;;  %v1274_v60 = vld [vmem:[%s2052_s4 + $0x2b0] sm:$0xff]  ;;  %v1273_v1 = vld [vmem:[%s2052_s4 + $0x2a8] sm:$0xff]  ;;  %v1256_v3 = vld [vmem:[%s2052_s4 + $0x220] sm:$0xff] }
  0x2a   : > { %579 = vmatpush.msra.mxu0 %v1220_v4  ;;  %624 = vmatpush.msra.mxu2 %v475_v22  ;;  %468 = vst [vmem:[#allocation2 + $0x20] sm:$0x1] %v454_v33  ;;  %v1709_v42 = vsel %vm451_vm1, %v453_v35, %v456_v36  ;;  %v551_v45 = vrot.slane %v1694_v37, 1  ;;  %v1272_v4 = vld [vmem:[%s2052_s4 + $0x2a0] sm:$0xff]  ;;  %v1255_v6 = vld [vmem:[%s2052_s4 + $0x218] sm:$0xff]  ;;  %v699_v14 = vrot.slane %v1694_v37, 2 }
  0x2b   : > { %602 = vmatpush.msra.mxu1 %v1236_v5  ;;  %647 = vmatpush.msra.mxu3 %v491_v23  ;;  %465 = vst [vmem:[#allocation2 + $0x8] sm:$0xfe] %v453_v35  ;;  %v554_v51 = vrot.slane %v1709_v42, 1  ;;  %v1270_v15 = vld [vmem:[%s2052_s4 + $0x290] sm:$0xff]  ;;  %v1253_v16 = vld [vmem:[%s2052_s4 + $0x208] sm:$0xff]  ;;  %v1252_v20 = vld [vmem:[%s2052_s4 + $0x200] sm:$0xff] }
  0x2c   : > { %712 = vmatpush.msrb.mxu0 %v1267_v10  ;;  %625 = vmatpush.msra.mxu2 %v474_v31  ;;  %469 = vst [vmem:[#allocation2 + $0x28] sm:$0x1] %v456_v36  ;;  %v1271_v10 = vld [vmem:[%s2052_s4 + $0x298] sm:$0xff]  ;;  %v1268_v22 = vld [vmem:[%s2052_s4 + $0x280] sm:$0xff]  ;;  %v1290_v32 = vld [vmem:[%s2055_s7 + $0x70] sm:$0xff] }
  0x2d   : > { %735 = vmatpush.msrb.mxu1 %v1283_v11  ;;  %648 = vmatpush.msra.mxu3 %v490_v34  ;;  %v1254_v11 = vld [vmem:[%s2052_s4 + $0x210] sm:$0xff]  ;;  %v1291_v30 = vld [vmem:[%s2055_s7 + $0x78] sm:$0xff]  ;;  %v1289_v34 = vld [vmem:[%s2055_s7 + $0x68] sm:$0xff] }
  0x2e   : > { %713 = vmatpush.msrb.mxu0 %v1266_v18  ;;  %v702_v18 = vrot.slane %v1709_v42, 2  ;;  %v786_v31 = vld [vmem:[%s2055_s7 + $0x38] sm:$0xff]  ;;  %812 = vmatpush.msrb.mxu2 %v1291_v30  ;;  %v785_v33 = vld [vmem:[%s2055_s7 + $0x30] sm:$0xff]  ;;  %v784_v35 = vld [vmem:[%s2055_s7 + $0x28] sm:$0xff] }
  0x2f   : > { %736 = vmatpush.msrb.mxu1 %v1282_v19  ;;  %v1269_v19 = vld [vmem:[%s2052_s4 + $0x288] sm:$0xff]  ;;  %841 = vmatpush.msrb.mxu3 %v786_v31  ;;  %v1288_v36 = vld [vmem:[%s2055_s7 + $0x60] sm:$0xff] }
  0x30   : > { %714 = vmatpush.msrb.mxu0 %v1265_v21  ;;  %v470_v46 = vld [vmem:[#allocation2] sm:$0xff]  ;;  %813 = vmatpush.msrb.mxu2 %v1290_v32  ;;  %v1319_v31 = vld [vmem:[%s2058_s10 + $0xe8] sm:$0xff] }
  0x31   : > { %737 = vmatpush.msrb.mxu1 %v1281_v27  ;;  %v506_v48 = vld [vmem:[#allocation2] sm:$0xfe]  ;;  %626 = vmatmul.f32.vlgmr.msra.gmra.mxu2 %v470_v46  ;;  %v508_v57 = vld [vmem:[#allocation2 + $0x20] sm:$0x1] }
  0x32   : > { %715 = vmatpush.msrb.mxu0 %v1264_v28  ;;  %v550_v50 = vrot.slane %v506_v48, 1  ;;  %v471_v54 = vld [vmem:[#allocation2 + $0x8] sm:$0xff]  ;;  %v556_v63 = vrot.slane %v508_v57, 1  ;;  %v656_v8 = vld [vmem:[#allocation2] sm:$0xfc]  ;;  %842 = vmatpush.msrb.mxu3 %v785_v33  ;;  %v1302_v48 = vld [vmem:[%s2055_s7 + $0xb0] sm:$0xff] }
  0x33   : > { %738 = vmatpush.msrb.mxu1 %v1280_v29  ;;  %v507_v56 = vld [vmem:[#allocation2 + $0x8] sm:$0xfe]  ;;  %649 = vmatmul.f32.vlgmr.msra.gmra.mxu3 %v471_v54  ;;  %v509_v61 = vld [vmem:[#allocation2 + $0x28] sm:$0x1]  ;;  %v698_v13 = vrot.slane %v656_v8, 2  ;;  %v779_v46 = vld [vmem:[%s2055_s7] sm:$0xff] }
  0x34   : > { %716 = vmatpush.msrb.mxu0 %v1263_v38  ;;  %v552_v55 = vsel %vm549_vm2, %v550_v50, %v551_v45  ;;  %v553_v58 = vrot.slane %v507_v56, 1  ;;  %v558_v2 = vrot.slane %v509_v61, 1  ;;  %v557_v5 = vsel %vm549_vm2, %v551_v45, %v556_v63  ;;  %v657_v12 = vld [vmem:[#allocation2 + $0x8] sm:$0xfc]  ;;  %v658_v23 = vld [vmem:[#allocation2 + $0x20] sm:$0x3]  ;;  %814 = vmatpush.msrb.mxu2 %v1289_v34 }
  0x35   : > { %739 = vmatpush.msrb.mxu1 %v1279_v39  ;;  %580 = vmatmul.f32.vlgmr.msra.gmra.mxu0 %v552_v55  ;;  %v701_v17 = vrot.slane %v657_v12, 2  ;;  %v700_v21 = vsel %vm697_vm3, %v698_v13, %v699_v14  ;;  %v659_v25 = vld [vmem:[#allocation2 + $0x28] sm:$0x3]  ;;  %v704_v26 = vrot.slane %v658_v23, 2  ;;  %v1287_v38 = vld [vmem:[%s2055_s7 + $0x58] sm:$0xff]  ;;  %v1284_v45 = vld [vmem:[%s2055_s7 + $0x40] sm:$0xff] }
  0x36   : > { %717 = vmatpush.msrb.mxu0 %v1262_v40  ;;  %v555_v62 = vsel %vm549_vm2, %v553_v58, %v554_v51  ;;  %v559_v9 = vsel %vm549_vm2, %v554_v51, %v558_v2  ;;  %v706_v27 = vrot.slane %v659_v25, 2  ;;  %843 = vmatpush.msrb.mxu3 %v784_v35  ;;  %v782_v39 = vld [vmem:[%s2055_s7 + $0x18] sm:$0xff]  ;;  %v1286_v40 = vld [vmem:[%s2055_s7 + $0x50] sm:$0xff]  ;;  %v1300_v51 = vld [vmem:[%s2055_s7 + $0xa0] sm:$0xff] }
  0x37   : > { %740 = vmatpush.msrb.mxu1 %v1278_v41  ;;  %v703_v24 = vsel %vm697_vm3, %v701_v17, %v702_v18  ;;  %v705_v28 = vsel %vm697_vm3, %v699_v14, %v704_v26  ;;  %815 = vmatpush.msrb.mxu2 %v1288_v36  ;;  %v781_v41 = vld [vmem:[%s2055_s7 + $0x10] sm:$0xff]  ;;  %v1299_v55 = vld [vmem:[%s2055_s7 + $0x98] sm:$0xff]  ;;  %v1296_v61 = vld [vmem:[%s2055_s7 + $0x80] sm:$0xff] }
  0x38   : > { %718 = vmatpush.msrb.mxu0 %v1261_v43  ;;  %603 = vmatmul.f32.vlgmr.msra.gmra.mxu1 %v555_v62  ;;  %v707_v29 = vsel %vm697_vm3, %v702_v18, %v706_v27  ;;  %v1285_v43 = vld [vmem:[%s2055_s7 + $0x48] sm:$0xff]  ;;  %v1298_v56 = vld [vmem:[%s2055_s7 + $0x90] sm:$0xff]  ;;  %v1372_v2 = vld [vmem:[%s2053_s5] ss:$0 sm:$0xff] }
  0x39   : > { %741 = vmatpush.msrb.mxu1 %v1277_v44  ;;  %629 = vmatmul.f32.gmra.mxu2 %v1694_v37  ;;  %v783_v37 = vld [vmem:[%s2055_s7 + $0x20] sm:$0xff]  ;;  %v780_v44 = vld [vmem:[%s2055_s7 + $0x8] sm:$0xff]  ;;  %v1320_v26 = vld [vmem:[%s2058_s10 + $0xf0] sm:$0xff] }
  0x3a   : > { %719 = vmatpush.msrb.mxu0 %v1260_v47  ;;  %844 = vmatpush.msrb.mxu3 %v783_v37  ;;  %v1303_v47 = vld [vmem:[%s2055_s7 + $0xb8] sm:$0xff]  ;;  %v1318_v30 = vld [vmem:[%s2058_s10 + $0xe0] sm:$0xff]  ;;  %v929_v33 = vld [vmem:[%s2058_s10 + $0x68] sm:$0xff] }
  0x3b   : > { %742 = vmatpush.msrb.mxu1 %v1276_v49  ;;  %652 = vmatmul.f32.gmra.mxu3 %v1709_v42  ;;  %v1301_v49 = vld [vmem:[%s2055_s7 + $0xa8] sm:$0xff]  ;;  %v1321_v27 = vld [vmem:[%s2058_s10 + $0xf8] sm:$0xff]  ;;  %v928_v32 = vld [vmem:[%s2058_s10 + $0x60] sm:$0xff] }
  0x3c   : > { %720 = vmatpush.msrb.mxu0 %v1259_v52  ;;  %816 = vmatpush.msrb.mxu2 %v1287_v38  ;;  %v1316_v34 = vld [vmem:[%s2058_s10 + $0xd0] sm:$0xff]  ;;  %v1317_v35 = vld [vmem:[%s2058_s10 + $0xd8] sm:$0xff]  ;;  %v1314_v38 = vld [vmem:[%s2058_s10 + $0xc0] sm:$0xff] }
  0x3d   : > { %743 = vmatpush.msrb.mxu1 %v1275_v53  ;;  %583 = vmatmul.f32.gmra.mxu0 %v557_v5  ;;  %v1373_v5 = vld [vmem:[%s2054_s6] ss:$0 sm:$0xff]  ;;  %v926_v36 = vld [vmem:[%s2058_s10 + $0x50] sm:$0xff]  ;;  %v927_v37 = vld [vmem:[%s2058_s10 + $0x58] sm:$0xff] }
  0x3e   : > { %721 = vmatpush.msrb.mxu0 %v1258_v59  ;;  %845 = vmatpush.msrb.mxu3 %v782_v39  ;;  %v1297_v59 = vld [vmem:[%s2055_s7 + $0x88] sm:$0xff] }
  0x3f   : > { %744 = vmatpush.msrb.mxu1 %v1274_v60  ;;  %817 = vmatpush.msrb.mxu2 %v1286_v40  ;;  %v1315_v39 = vld [vmem:[%s2058_s10 + $0xc8] sm:$0xff]  ;;  %v924_v40 = vld [vmem:[%s2058_s10 + $0x40] sm:$0xff] }
  0x40   : > { %722 = vmatpush.msrb.mxu0 %v1257_v0  ;;  %606 = vmatmul.f32.gmra.mxu1 %v559_v9 }
  0x41   : > { %745 = vmatpush.msrb.mxu1 %v1273_v1  ;;  %846 = vmatpush.msrb.mxu3 %v781_v41  ;;  %v925_v41 = vld [vmem:[%s2058_s10 + $0x48] sm:$0xff] }
  0x42   : > { %723 = vmatpush.msrb.mxu0 %v1256_v3  ;;  %818 = vmatpush.msrb.mxu2 %v1285_v43  ;;  %v1313_v43 = vld [vmem:[%s2058_s10 + $0xb8] sm:$0xff] }
  0x43   : > { %746 = vmatpush.msrb.mxu1 %v1272_v4  ;;  %847 = vmatpush.msrb.mxu3 %v780_v44  ;;  %v922_v44 = vld [vmem:[%s2058_s10 + $0x30] sm:$0xff] }
  0x44   : > { %724 = vmatpush.msrb.mxu0 %v1255_v6  ;;  %819 = vmatpush.msrb.mxu2 %v1284_v45  ;;  %v1310_v45 = vld [vmem:[%s2058_s10 + $0xa0] sm:$0xff] }
  0x45   : > { %747 = vmatpush.msrb.mxu1 %v1271_v10  ;;  %848 = vmatpush.msrb.mxu3 %v779_v46  ;;  %v1311_v46 = vld [vmem:[%s2058_s10 + $0xa8] sm:$0xff] }
  0x46   : > { %725 = vmatpush.msrb.mxu0 %v1254_v11  ;;  %881 = vmatpush.msra.mxu2 %v1303_v47  ;;  %v920_v47 = vld [vmem:[%s2058_s10 + $0x20] sm:$0xff] }
  0x47   : > { %748 = vmatpush.msrb.mxu1 %v1270_v15  ;;  %965 = vmatpush.msra.mxu3 %v1320_v26 }
  0x48   : > { %726 = vmatpush.msrb.mxu0 %v1253_v16  ;;  %882 = vmatpush.msra.mxu2 %v1302_v48  ;;  %v921_v48 = vld [vmem:[%s2058_s10 + $0x28] sm:$0xff] }
  0x49   : > { %749 = vmatpush.msrb.mxu1 %v1269_v19  ;;  %966 = vmatpush.msra.mxu3 %v1318_v30 }
  0x4a   : > { %727 = vmatpush.msrb.mxu0 %v1252_v20  ;;  %883 = vmatpush.msra.mxu2 %v1301_v49  ;;  %v1308_v49 = vld [vmem:[%s2058_s10 + $0x90] sm:$0xff] }
  0x4b   : > { %728 = vmatmul.f32.vlgmr.msrb.gmra.mxu0 %v700_v21  ;;  %750 = vmatpush.msrb.mxu1 %v1268_v22 }
  0x4c   : > { %751 = vmatmul.f32.vlgmr.msrb.gmra.mxu1 %v703_v24  ;;  %884 = vmatpush.msra.mxu2 %v1300_v51  ;;  %v918_v51 = vld [vmem:[%s2058_s10 + $0x10] sm:$0xff] }
  0x4d   : > { %988 = vmatpush.msra.mxu0 %v1321_v27  ;;  %967 = vmatpush.msra.mxu3 %v1316_v34 }
  0x4e   : > { %885 = vmatpush.msra.mxu2 %v1299_v55  ;;  %v1307_v55 = vld [vmem:[%s2058_s10 + $0x88] sm:$0xff] }
  0x4f   : > { %989 = vmatpush.msra.mxu0 %v1319_v31  ;;  %968 = vmatpush.msra.mxu3 %v1314_v38 }
  0x50   : > { %886 = vmatpush.msra.mxu2 %v1298_v56  ;;  %v916_v56 = vld [vmem:[%s2058_s10] sm:$0xff] }
  0x51   : > { %990 = vmatpush.msra.mxu0 %v1317_v35 }
  0x52   : > { %887 = vmatpush.msra.mxu2 %v1297_v59  ;;  %v1345_v59 = vld [vmem:[%s2058_s10 + $0x178] sm:$0xff] }
  0x53   : > { %731 = vmatmul.f32.gmra.mxu0 %v705_v28  ;;  %v930_v28 = vld [vmem:[%s2058_s10 + $0x70] sm:$0xff] }
  0x54   : > { %754 = vmatmul.f32.gmra.mxu1 %v707_v29  ;;  %888 = vmatpush.msra.mxu2 %v1296_v61  ;;  %v931_v29 = vld [vmem:[%s2058_s10 + $0x78] sm:$0xff]  ;;  %v1343_v61 = vld [vmem:[%s2058_s10 + $0x168] sm:$0xff] }
  0x55   : > { %1017 = vmatpush.msra.mxu1 %v930_v28  ;;  %991 = vmatpush.msra.mxu0 %v1315_v39 }
  0x57   : > { %1018 = vmatpush.msra.mxu1 %v928_v32  ;;  %992 = vmatpush.msra.mxu0 %v1313_v43 }
  0x59   : > { %1019 = vmatpush.msra.mxu1 %v926_v36  ;;  %993 = vmatpush.msra.mxu0 %v1311_v46 }
  0x5b   : > { %1020 = vmatpush.msra.mxu1 %v924_v40 }
  0x5d   : > { %1021 = vmatpush.msra.mxu1 %v922_v44 }
  0x5f   : > { %1022 = vmatpush.msra.mxu1 %v920_v47  ;;  %v1133_v47 = vld [vmem:[%s401_s19 + $0x18] sm:$0xff] }
  0x61   : > { %1023 = vmatpush.msra.mxu1 %v918_v51 }
  0x63   : > { %1024 = vmatpush.msra.mxu1 %v916_v56 }
  0x65   : > { %1355 = vmatpush.msrb.mxu1 %v1345_v59 }
  0x67   : > { %1356 = vmatpush.msrb.mxu1 %v1343_v61 }
  0xb2   : > { %v581_v42 = vpop.f32.mrf.mxu0 }
  0xb4   : > { %v627_v52 = vpop.f32.mrf.mxu2 }
  0xb5   : > { %v604_v7 = vpop.f32.mrf.mxu1 }
  0xb6   : > { %v605_v54 = vadd.f32 %v604_v7, %v581_v42  ;;  %v650_v57 = vpop.f32.mrf.mxu3  ;;  %v1312_v42 = vld [vmem:[%s2058_s10 + $0xb0] sm:$0xff]  ;;  %v923_v7 = vld [vmem:[%s2058_s10 + $0x38] sm:$0xff] }
  0xb7   : > { %969 = vmatpush.msra.mxu3 %v1312_v42 }
  0xb8   : > { %v628_v58 = vadd.f32 %v627_v52, %v605_v54  ;;  %v919_v52 = vld [vmem:[%s2058_s10 + $0x18] sm:$0xff]  ;;  %v1306_v54 = vld [vmem:[%s2058_s10 + $0x80] sm:$0xff] }
  0xb9   : > { %970 = vmatpush.msra.mxu3 %v1310_v45 }
  0xba   : > { %v584_v50 = vpop.f32.mrf.mxu0  ;;  %v651_v63 = vadd.f32 %v650_v57, %v628_v58  ;;  %v917_v57 = vld [vmem:[%s2058_s10 + $0x8] sm:$0xff]  ;;  %v1344_v58 = vld [vmem:[%s2058_s10 + $0x170] sm:$0xff] }
  0xbb   : > { %971 = vmatpush.msra.mxu3 %v1308_v49 }
  0xbc   : > { %v630_v3 = vpop.f32.mrf.mxu2 }
  0xbd   : > { %v607_v53 = vpop.f32.mrf.mxu1  ;;  %972 = vmatpush.msra.mxu3 %v1306_v54 }
  0xbe   : > { %v608_v0 = vadd.f32 %v607_v53, %v584_v50  ;;  %v653_v9 = vpop.f32.mrf.mxu3  ;;  %v1309_v50 = vld [vmem:[%s2058_s10 + $0x98] sm:$0xff] }
  0xbf   : > { %994 = vmatpush.msra.mxu0 %v1309_v50 }
  0xc0   : > { %v631_v6 = vadd.f32 %v630_v3, %v608_v0  ;;  %v1338_v0 = vld [vmem:[%s2058_s10 + $0x140] sm:$0xff] }
  0xc1   : > { %995 = vmatpush.msra.mxu0 %v1307_v55 }
  0xc2   : > { %v654_v13 = vadd.f32 %v653_v9, %v631_v6  ;;  %v1334_v6 = vld [vmem:[%s2058_s10 + $0x120] sm:$0xff]  ;;  %v1332_v9 = vld [vmem:[%s2058_s10 + $0x110] sm:$0xff] }
  0xc3   : > { %1111 = vmatpush.msrb.mxu0 %v1345_v59 }
  0xc5   : > { %1112 = vmatpush.msrb.mxu0 %v1343_v61 }
  0xc8   : > { %v729_v60 = vpop.f32.mrf.mxu0 }
  0xc9   : > { %v752_v62 = vpop.f32.mrf.mxu1 }
  0xca   : > { %v753_v1 = vadd.f32 %v752_v62, %v729_v60  ;;  %v1342_v60 = vld [vmem:[%s2058_s10 + $0x160] sm:$0xff]  ;;  %v1340_v62 = vld [vmem:[%s2058_s10 + $0x150] sm:$0xff] }
  0xcc   : > { %v758_v4 = vadd.f32 %v753_v1, %v651_v63  ;;  %v1341_v63 = vld [vmem:[%s2058_s10 + $0x158] sm:$0xff]  ;;  %v1339_v1 = vld [vmem:[%s2058_s10 + $0x148] sm:$0xff] }
  0xcd   : > { %1113 = vmatpush.msrb.mxu0 %v1341_v63  ;;  %1357 = vmatpush.msrb.mxu1 %v1341_v63 }
  0xce   : > { %v764_v8 = vmul.f32 %v1372_v2, %v758_v4  ;;  %v1336_v4 = vld [vmem:[%s2058_s10 + $0x130] sm:$0xff] }
  0xcf   : > { %1114 = vmatpush.msrb.mxu0 %v1339_v1  ;;  %1358 = vmatpush.msrb.mxu1 %v1339_v1 }
  0xd0   : > { %v732_v10 = vpop.f32.mrf.mxu0  ;;  %v770_v11 = vadd.f32 %v1373_v5, %v764_v8  ;;  %v1335_v8 = vld [vmem:[%s2058_s10 + $0x128] sm:$0xff] }
  0xd1   : > { %v755_v12 = vpop.f32.mrf.mxu1 }
  0xd2   : > { %v772_v14 = vmax.f32 %v770_v11, 0.0  ;;  %v756_v15 = vadd.f32 %v755_v12, %v732_v10  ;;  %v1333_v10 = vld [vmem:[%s2058_s10 + $0x118] sm:$0xff]  ;;  %v1330_v11 = vld [vmem:[%s2058_s10 + $0x100] sm:$0xff]  ;;  %v1331_v12 = vld [vmem:[%s2058_s10 + $0x108] sm:$0xff] }
  0xd4   : > { %775 = vst.msk [vmem:[#allocation3 + $0x1] sm:$0xff] %vm774_vm5, %v772_v14  ;;  %v759_v16 = vadd.f32 %v756_v15, %v654_v13  ;;  %v1374_v14 = vld [vmem:[%s2056_s8] ss:$0 sm:$0xff] }
  0xd6   : > { %v765_v17 = vmul.f32 %v1372_v2, %v759_v16 }
  0xd8   : > { %v771_v18 = vadd.f32 %v1373_v5, %v765_v17  ;;  %v1337_v5 = vld [vmem:[%s2058_s10 + $0x138] sm:$0xff]  ;;  %v1375_v17 = vld [vmem:[%s2057_s9] ss:$0 sm:$0xff] }
  0xd9   : > { %1115 = vmatpush.msrb.mxu0 %v1337_v5  ;;  %1359 = vmatpush.msrb.mxu1 %v1337_v5 }
  0xda   : > { %v773_v19 = vmax.f32 %v771_v18, 0.0 }
  0xdb   : > { %v787_v20 = vld [vmem:[#allocation3 + $0x1] sm:$0xff]  ;;  %1116 = vmatpush.msrb.mxu0 %v1335_v8  ;;  %1360 = vmatpush.msrb.mxu1 %v1335_v8 }
  0xdc   : > { %v777_v21 = vld [vmem:[#allocation3] sm:$0xff]  ;;  %776 = vst.msk [vmem:[#allocation3 + $0x9] sm:$0xff] %vm774_vm5, %v773_v19  ;;  %1292 = vmatmul.msk.f32.vlgmr.msrb.gmra.mxu2 %vm774_vm5, %v787_v20 }
  0xdd   : > { %1294 = vmatmul.msk.f32.vlgmr.msrb.gmra.mxu3 %vm774_vm5, %v777_v21  ;;  %1040 = vmatpush.msrb.mxu2 %v931_v29 }
  0xde   : > { %1088 = vmatpush.msrb.mxu3 %v1344_v58  ;;  %1117 = vmatpush.msrb.mxu0 %v1333_v10  ;;  %v1132_v58 = vld [vmem:[%s401_s19 + $0x10] sm:$0xff] }
  0xdf   : > { %1041 = vmatpush.msrb.mxu2 %v929_v33  ;;  %1361 = vmatpush.msrb.mxu1 %v1333_v10 }
  0xe0   : > { %1089 = vmatpush.msrb.mxu3 %v1342_v60  ;;  %1118 = vmatpush.msrb.mxu0 %v1331_v12 }
  0xe1   : > { %1042 = vmatpush.msrb.mxu2 %v927_v37  ;;  %1362 = vmatpush.msrb.mxu1 %v1331_v12 }
  0xe2   : > { %1090 = vmatpush.msrb.mxu3 %v1340_v62 }
  0xe3   : > { %v788_v22 = vld [vmem:[#allocation3 + $0x9] sm:$0xff]  ;;  %1043 = vmatpush.msrb.mxu2 %v925_v41 }
  0xe4   : > { %v778_v23 = vld [vmem:[#allocation3 + $0x8] sm:$0xff]  ;;  %1293 = vmatmul.msk.f32.gmra.mxu2 %vm774_vm5, %v788_v22  ;;  %1091 = vmatpush.msrb.mxu3 %v1338_v0 }
  0xe5   : > { %1295 = vmatmul.msk.f32.gmra.mxu3 %vm774_vm5, %v778_v23  ;;  %v856_v24 = vld [vmem:[#allocation3 + $0x2] sm:$0xff]  ;;  %v857_v25 = vld [vmem:[#allocation3 + $0xa] sm:$0xff]  ;;  %1044 = vmatpush.msrb.mxu2 %v923_v7  ;;  %v1131_v7 = vld [vmem:[%s401_s19 + $0x8] sm:$0xff] }
  0xe6   : > { %1092 = vmatpush.msrb.mxu3 %v1336_v4 }
  0xe7   : > { %1045 = vmatpush.msrb.mxu2 %v921_v48 }
  0xe8   : > { %1093 = vmatpush.msrb.mxu3 %v1334_v6 }
  0xe9   : > { %1046 = vmatpush.msrb.mxu2 %v919_v52 }
  0xea   : > { %1094 = vmatpush.msrb.mxu3 %v1332_v9 }
  0xeb   : > { %1047 = vmatpush.msrb.mxu2 %v917_v57 }
  0xec   : > { %1304 = vmatmul.msk.f32.vlgmr.msra.gmra.mxu2 %vm774_vm5, %v856_v24  ;;  %1095 = vmatpush.msrb.mxu3 %v1330_v11 }
  0xf4   : > { %1305 = vmatmul.msk.f32.gmra.mxu2 %vm774_vm5, %v857_v25 }
 0x15f   : > { %v821_v53 = vpop.f32.mrf.mxu2 }
 0x160   : > { %v850_v3 = vpop.f32.mrf.mxu3 }
 0x161   : > { %v851_v13 = vadd.f32 %v850_v3, %v821_v53  ;;  %v1130_v53 = vld [vmem:[%s401_s19] sm:$0xff] }
 0x167   : > { %v824_v2 = vpop.f32.mrf.mxu2 }
 0x168   : > { %v853_v19 = vpop.f32.mrf.mxu3 }
 0x169   : > { %v854_v21 = vadd.f32 %v853_v19, %v824_v2 }
 0x16f   : > { %v890_v15 = vpop.f32.mrf.mxu2 }
 0x170   : > { %v896_v16 = vadd.f32 %v890_v15, %v851_v13 }
 0x172   : > { %v902_v18 = vmul.f32 %v1374_v14, %v896_v16 }
 0x174   : > { %v908_v20 = vadd.f32 %v1375_v17, %v902_v18 }
 0x176   : > { %v910_v22 = vmax.f32 %v908_v20, 0.0 }
 0x177   : > { %v893_v23 = vpop.f32.mrf.mxu2 }
 0x178   : > { %912 = vst.msk [vmem:[#allocation3 + $0x1] sm:$0xff] %vm774_vm5, %v910_v22  ;;  %v897_v24 = vadd.f32 %v893_v23, %v854_v21 }
 0x17a   : > { %v903_v25 = vmul.f32 %v1374_v14, %v897_v24 }
 0x17c   : > { %v909_v26 = vadd.f32 %v1375_v17, %v903_v25 }
 0x17e   : > { %v911_v27 = vmax.f32 %v909_v26, 0.0 }
 0x17f   : > { %v932_v28 = vld [vmem:[#allocation3 + $0x1] sm:$0xff] }
 0x180   : > { %v914_v29 = vld [vmem:[#allocation3] sm:$0xff]  ;;  %913 = vst.msk [vmem:[#allocation3 + $0x9] sm:$0xff] %vm774_vm5, %v911_v27  ;;  %1322 = vmatmul.msk.f32.vlgmr.msra.gmra.mxu3 %vm774_vm5, %v932_v28  ;;  %1324 = vmatmul.msk.f32.vlgmr.msra.gmra.mxu0 %vm774_vm5, %v932_v28 }
 0x181   : > { %1326 = vmatmul.msk.f32.vlgmr.msra.gmra.mxu1 %vm774_vm5, %v914_v29  ;;  %1328 = vmatmul.msk.f32.vlgmr.msrb.gmra.mxu2 %vm774_vm5, %v914_v29 }
 0x187   : > { %v933_v30 = vld [vmem:[#allocation3 + $0x9] sm:$0xff] }
 0x188   : > { %v915_v31 = vld [vmem:[#allocation3 + $0x8] sm:$0xff]  ;;  %1323 = vmatmul.msk.f32.gmra.mxu3 %vm774_vm5, %v933_v30  ;;  %1325 = vmatmul.msk.f32.gmra.mxu0 %vm774_vm5, %v933_v30 }
 0x189   : > { %1327 = vmatmul.msk.f32.gmra.mxu1 %vm774_vm5, %v915_v31  ;;  %1329 = vmatmul.msk.f32.gmra.mxu2 %vm774_vm5, %v915_v31  ;;  %v1055_v32 = vld [vmem:[#allocation3 + $0x2] sm:$0xff]  ;;  %v1056_v33 = vld [vmem:[#allocation3 + $0xa] sm:$0xff] }
 0x190   : > { %1346 = vmatmul.msk.f32.vlgmr.msrb.gmra.mxu3 %vm774_vm5, %v1055_v32  ;;  %1348 = vmatmul.msk.f32.vlgmr.msrb.gmra.mxu0 %vm774_vm5, %v1055_v32 }
 0x191   : > { %1349 = vmatmul.msk.f32.vlgmr.msrb.gmra.mxu1 %vm774_vm5, %v1056_v33 }
 0x198   : > { %1347 = vmatmul.msk.f32.gmra.mxu3 %vm774_vm5, %v1056_v33 }
 0x1fd   : > { %v997_v34 = vpop.f32.mrf.mxu0 }
 0x1fe   : > { %v1026_v35 = vpop.f32.mrf.mxu1 }
 0x203   : > { %v974_v36 = vpop.f32.mrf.mxu3 }
 0x204   : > { %v1049_v37 = vpop.f32.mrf.mxu2  ;;  %v1027_v51 = vadd.f32 %v1026_v35, %v974_v36 }
 0x205   : > { %v1000_v38 = vpop.f32.mrf.mxu0  ;;  %v1050_v41 = vadd.f32 %v1049_v37, %v997_v34 }
 0x206   : > { %v1029_v39 = vpop.f32.mrf.mxu1 }
 0x20b   : > { %v977_v40 = vpop.f32.mrf.mxu3 }
 0x20c   : > { %v1052_v42 = vpop.f32.mrf.mxu2  ;;  %v1030_v56 = vadd.f32 %v1029_v39, %v977_v40 }
 0x20d   : > { %v1053_v43 = vadd.f32 %v1052_v42, %v1000_v38  ;;  %v1120_v44 = vpop.f32.mrf.mxu0 }
 0x20e   : > { %v1127_v45 = vadd.f32 %v1120_v44, %v1050_v41  ;;  %v1123_v46 = vpop.f32.mrf.mxu1 }
 0x20f   : > { %v1129_v48 = vadd.f32 %v1123_v46, %v1053_v43 }
 0x210   : > { %v1135_v49 = vadd.f32 %v1131_v7, %v1127_v45 }
 0x211   : > { %v1137_v50 = vadd.f32 %v1133_v47, %v1129_v48 }
 0x212   : > { %1139 = vst [vmem:[%s406_s22 + $0x8] sm:$0xff] %v1135_v49 }
 0x213   : > { %1141 = vst [vmem:[%s406_s22 + $0x18] sm:$0xff] %v1137_v50  ;;  %v1097_v52 = vpop.f32.mrf.mxu3 }
 0x214   : > { %v1126_v54 = vadd.f32 %v1097_v52, %v1027_v51 }
 0x216   : > { %v1134_v55 = vadd.f32 %v1130_v53, %v1126_v54 }
 0x218   : > { %1138 = vst [vmem:[%s406_s22] sm:$0xff] %v1134_v55 }
 0x21b   : > { %v1100_v57 = vpop.f32.mrf.mxu3 }
 0x21c   : > { %v1128_v59 = vadd.f32 %v1100_v57, %v1030_v56 }
 0x21e   : > { %v1136_v60 = vadd.f32 %v1132_v58, %v1128_v59 }
 0x220   : > { %1140 = vst [vmem:[%s406_s22 + $0x10] sm:$0xff] %v1136_v60 }
 0x221 PF: > { %s21_s17 = sadd.s32 1, %s1382_s17  }
 0x222   : > { %p18_p4 = scmp.ge.s32.totalorder %s21_s17, 4  }
 0x224   :  { %20 = sbr.rel (!%p18_p4) target bundleno = 1 (0x1), region = 104 }

</bundles_post_ra>
